<compile_context>
chip_gen: v7x
topology: tpu7x:2x2x1
jax: 0.10.0
libtpu: 0.0.40
codegen_flags: <defaults>
</compile_context>

<pallas_src>
import functools

import jax
import jax.numpy as jnp
from jax.experimental import pallas as pl
from jax.experimental.pallas import tpu as pltpu

N_BLUR = 7
PAD = (N_BLUR - 1) // 2


def random_blur_kernel_jax(key,
                           probs=(0.25, 0.25),
                           N_blur=N_BLUR,
                           sigrange_gauss=(1.0, 3.0),
                           sigrange_line=(0.25, 1.0),
                           wmin_line=3.0):
    """JAX port of random_blur_kernel; returns the NxN taps v.

    The full PyTorch filter is f[3,3,N,N] with f[c,c] = v and zeros elsewhere.
    """
    N = N_blur
    ks = jax.random.split(key, 5)
    ii, jj = jnp.meshgrid(jnp.arange(N), jnp.arange(N), indexing="ij")
    coords = jnp.stack([ii, jj], axis=-1).astype(jnp.float32) - 0.5 * (N - 1)
    manhat = jnp.sum(jnp.abs(coords), axis=-1)

    vals_nothing = (manhat < 0.5).astype(jnp.float32)

    sig_gauss = jax.random.uniform(ks[0]) * (sigrange_gauss[1] - sigrange_gauss[0]) + sigrange_gauss[0]
    vals_gauss = jnp.exp(-jnp.sum(coords ** 2, axis=-1) / 2.0 / sig_gauss ** 2)

    theta = jax.random.uniform(ks[1]) * 2.0 * jnp.pi
    dirv = jnp.stack([jnp.cos(theta), jnp.sin(theta)])
    dists = jnp.sum(coords * dirv, axis=-1)
    sig_line = jax.random.uniform(ks[2]) * (sigrange_line[1] - sigrange_line[0]) + sigrange_line[0]
    w_line = jax.random.uniform(ks[3]) * (0.5 * (N - 1) + 0.1 - wmin_line) + wmin_line
    vals_line = jnp.exp(-dists ** 2 / 2.0 / sig_line ** 2) * (manhat < w_line).astype(jnp.float32)

    t = jax.random.uniform(ks[4])
    vals = vals_nothing
    vals = jnp.where(t < probs[0] + probs[1], vals_line, vals)
    vals = jnp.where(t < probs[0], vals_gauss, vals)

    v = vals / jnp.sum(vals)
    return v.astype(jnp.float32)  # (N, N)


def _round_up(x, m):
    return (x + m - 1) // m * m


def _planes_per_step(bc, wp):
    """Smallest divisor of bc whose slab (g * wp lanes) is >=128 lanes wide."""
    target = -(-128 // wp)  # ceil(128 / wp)
    for g in range(min(target, bc), bc + 1):
        if bc % g == 0:
            return g
    return bc


def _blur_kernel(k_ref, x_ref, o_ref, *, wtot):
    # k_ref: (7, 7) f32 taps in SMEM (each read exactly once).
    # x_ref: (1, Hp, W_scr) padded, lane-packed slab for this group of planes.
    # o_ref: (1, H, wtot) lane-dense output slab (wtot >= 128).
    h_out = o_ref.shape[1]
    x = x_ref[0]                                     # (Hp, W_scr)
    acc = jnp.zeros((h_out, wtot), jnp.float32)
    for j in range(N_BLUR):
        xj = x[:, j:j + wtot]                        # one lane shift per j (7 total, not 49)
        for i in range(N_BLUR):
            acc = acc + k_ref[i, j] * xj[i:i + h_out, :]   # sublane-only window
    o_ref[0] = acc.astype(o_ref.dtype)


def blur_forward(img, kern_v):
    """img: (B, 3, H, W), kern_v: (7, 7) taps. Returns (B, 3, H, W)."""
    B, C, H, W = img.shape
    BC = B * C
    Hp, Wp = H + 2 * PAD, W + 2 * PAD

    G = _planes_per_step(BC, Wp)              # planes packed per grid step
    S = BC // G                               # grid steps
    Wtot = G * Wp                             # useful slab width (lanes)
    W_scr = _round_up(Wtot + 2 * PAD, 128)    # + shift slack, 128-lane aligned

    # Pack planes side-by-side along lanes with stride Wp: each plane's own
    # zero halo isolates it from its lane-neighbours under shifts <= 3.
    # (At production sizes this pad/pack should be fused into the kernel.)
    x = img.reshape(BC, H, W).astype(jnp.float32)
    xp = jnp.pad(x, ((0, 0), (PAD, PAD), (PAD, PAD)))                  # (BC, Hp, Wp)
    slab = xp.reshape(S, G, Hp, Wp).transpose(0, 2, 1, 3).reshape(S, Hp, Wtot)
    slab = jnp.pad(slab, ((0, 0), (0, 0), (0, W_scr - Wtot)))          # lane slack

    out_slab = pl.pallas_call(
        functools.partial(_blur_kernel, wtot=Wtot),
        out_shape=jax.ShapeDtypeStruct((S, H, Wtot), jnp.float32),
        grid=(S,),
        in_specs=[
            pl.BlockSpec(memory_space=pltpu.MemorySpace.SMEM),   # 7x7 taps
            pl.BlockSpec((1, Hp, W_scr), lambda s: (s, 0, 0)),   # one slab / step
        ],
        out_specs=pl.BlockSpec((1, H, Wtot), lambda s: (s, 0, 0)),
        compiler_params=pltpu.CompilerParams(
            dimension_semantics=("parallel",)),
    )(kern_v, slab)

    # Strip the per-plane halo columns and restore (B, C, H, W).
    out = out_slab.reshape(S, H, G, Wp)[..., :W]           # (S, H, G, W)
    out = out.transpose(0, 2, 1, 3).reshape(B, C, H, W)
    return out.astype(img.dtype)


if __name__ == "__main__":
    key = jax.random.PRNGKey(0)
    k_img, k_filt = jax.random.split(key)

    B, C, H, W = 2, 3, 16, 16  # BLUR's filter requires 3 channels
    img = jax.random.normal(k_img, (B, C, H, W), dtype=jnp.float32)

    v = random_blur_kernel_jax(k_filt)  # (7, 7), deterministic

    out = blur_forward(img, v)
    out = jax.block_until_ready(out)

    # Reference: full PyTorch-style conv2d with the block-diagonal f[3,3,7,7].
    f = jnp.zeros((3, 3, N_BLUR, N_BLUR), jnp.float32)
    f = f.at[0, 0].set(v).at[1, 1].set(v).at[2, 2].set(v)
    ref = jax.lax.conv_general_dilated(
        img, f, window_strides=(1, 1), padding=[(PAD, PAD), (PAD, PAD)],
        dimension_numbers=("NCHW", "OIHW", "NCHW"))

    assert out.shape == (B, C, H, W)
    assert jnp.allclose(out, ref, atol=1e-5, rtol=1e-5)
    print("KERNEL_OK")
</pallas_src>

<mosaic_0001>
module attributes {stable_mosaic.version = 11 : i64} {
  func.func @_blur_kernel(%arg0: i32, %arg1: memref<7x7xf32, #tpu.memory_space<smem>>, %arg2: memref<1x22x256xf32, #tpu.memory_space<vmem>>, %arg3: memref<1x16x132xf32, #tpu.memory_space<vmem>>) attributes {dimension_semantics = [#tpu.dimension_semantics<parallel>], iteration_bounds = array<i64: 1>, scalar_prefetch = 0 : i64, scratch_operands = 0 : i64, tpu.core_type = #tpu.core_type<tc>, window_params = [{transform_indices = @transform_0, window_bounds = array<i64: 7, 7>}, {transform_indices = @transform_1, window_bounds = array<i64: 1, 22, 256>}, {transform_indices = @transform_2, window_bounds = array<i64: 1, 16, 132>}]} {
    %c0 = arith.constant 0 : index
    %c0_0 = arith.constant 0 : index
    %c0_1 = arith.constant 0 : index
    %0 = vector.load %arg2[%c0, %c0_0, %c0_1] : memref<1x22x256xf32, #tpu.memory_space<vmem>>, vector<1x22x256xf32>
    %1 = vector.shape_cast %0 : vector<1x22x256xf32> to vector<22x256xf32>
    %cst = arith.constant 0.000000e+00 : f32
    %2 = vector.broadcast %cst : f32 to vector<16x132xf32>
    %3 = vector.extract_strided_slice %1 {offsets = [0, 0], sizes = [22, 132], strides = [1, 1]} : vector<22x256xf32> to vector<22x132xf32>
    %c0_2 = arith.constant 0 : index
    %c0_3 = arith.constant 0 : index
    %4 = memref.load %arg1[%c0_2, %c0_3] : memref<7x7xf32, #tpu.memory_space<smem>>
    %5 = vector.extract_strided_slice %3 {offsets = [0, 0], sizes = [16, 132], strides = [1, 1]} : vector<22x132xf32> to vector<16x132xf32>
    %6 = vector.broadcast %4 : f32 to vector<16x132xf32>
    %7 = arith.mulf %6, %5 : vector<16x132xf32>
    %8 = arith.addf %2, %7 : vector<16x132xf32>
    %c1 = arith.constant 1 : index
    %c0_4 = arith.constant 0 : index
    %9 = memref.load %arg1[%c1, %c0_4] : memref<7x7xf32, #tpu.memory_space<smem>>
    %10 = vector.extract_strided_slice %3 {offsets = [1, 0], sizes = [16, 132], strides = [1, 1]} : vector<22x132xf32> to vector<16x132xf32>
    %11 = vector.broadcast %9 : f32 to vector<16x132xf32>
    %12 = arith.mulf %11, %10 : vector<16x132xf32>
    %13 = arith.addf %8, %12 : vector<16x132xf32>
    %c2 = arith.constant 2 : index
    %c0_5 = arith.constant 0 : index
    %14 = memref.load %arg1[%c2, %c0_5] : memref<7x7xf32, #tpu.memory_space<smem>>
    %15 = vector.extract_strided_slice %3 {offsets = [2, 0], sizes = [16, 132], strides = [1, 1]} : vector<22x132xf32> to vector<16x132xf32>
    %16 = vector.broadcast %14 : f32 to vector<16x132xf32>
    %17 = arith.mulf %16, %15 : vector<16x132xf32>
    %18 = arith.addf %13, %17 : vector<16x132xf32>
    %c3 = arith.constant 3 : index
    %c0_6 = arith.constant 0 : index
    %19 = memref.load %arg1[%c3, %c0_6] : memref<7x7xf32, #tpu.memory_space<smem>>
    %20 = vector.extract_strided_slice %3 {offsets = [3, 0], sizes = [16, 132], strides = [1, 1]} : vector<22x132xf32> to vector<16x132xf32>
    %21 = vector.broadcast %19 : f32 to vector<16x132xf32>
    %22 = arith.mulf %21, %20 : vector<16x132xf32>
    %23 = arith.addf %18, %22 : vector<16x132xf32>
    %c4 = arith.constant 4 : index
    %c0_7 = arith.constant 0 : index
    %24 = memref.load %arg1[%c4, %c0_7] : memref<7x7xf32, #tpu.memory_space<smem>>
    %25 = vector.extract_strided_slice %3 {offsets = [4, 0], sizes = [16, 132], strides = [1, 1]} : vector<22x132xf32> to vector<16x132xf32>
    %26 = vector.broadcast %24 : f32 to vector<16x132xf32>
    %27 = arith.mulf %26, %25 : vector<16x132xf32>
    %28 = arith.addf %23, %27 : vector<16x132xf32>
    %c5 = arith.constant 5 : index
    %c0_8 = arith.constant 0 : index
    %29 = memref.load %arg1[%c5, %c0_8] : memref<7x7xf32, #tpu.memory_space<smem>>
    %30 = vector.extract_strided_slice %3 {offsets = [5, 0], sizes = [16, 132], strides = [1, 1]} : vector<22x132xf32> to vector<16x132xf32>
    %31 = vector.broadcast %29 : f32 to vector<16x132xf32>
    %32 = arith.mulf %31, %30 : vector<16x132xf32>
    %33 = arith.addf %28, %32 : vector<16x132xf32>
    %c6 = arith.constant 6 : index
    %c0_9 = arith.constant 0 : index
    %34 = memref.load %arg1[%c6, %c0_9] : memref<7x7xf32, #tpu.memory_space<smem>>
    %35 = vector.extract_strided_slice %3 {offsets = [6, 0], sizes = [16, 132], strides = [1, 1]} : vector<22x132xf32> to vector<16x132xf32>
    %36 = vector.broadcast %34 : f32 to vector<16x132xf32>
    %37 = arith.mulf %36, %35 : vector<16x132xf32>
    %38 = arith.addf %33, %37 : vector<16x132xf32>
    %39 = vector.extract_strided_slice %1 {offsets = [0, 1], sizes = [22, 132], strides = [1, 1]} : vector<22x256xf32> to vector<22x132xf32>
    %c0_10 = arith.constant 0 : index
    %c1_11 = arith.constant 1 : index
    %40 = memref.load %arg1[%c0_10, %c1_11] : memref<7x7xf32, #tpu.memory_space<smem>>
    %41 = vector.extract_strided_slice %39 {offsets = [0, 0], sizes = [16, 132], strides = [1, 1]} : vector<22x132xf32> to vector<16x132xf32>
    %42 = vector.broadcast %40 : f32 to vector<16x132xf32>
    %43 = arith.mulf %42, %41 : vector<16x132xf32>
    %44 = arith.addf %38, %43 : vector<16x132xf32>
    %c1_12 = arith.constant 1 : index
    %c1_13 = arith.constant 1 : index
    %45 = memref.load %arg1[%c1_12, %c1_13] : memref<7x7xf32, #tpu.memory_space<smem>>
    %46 = vector.extract_strided_slice %39 {offsets = [1, 0], sizes = [16, 132], strides = [1, 1]} : vector<22x132xf32> to vector<16x132xf32>
    %47 = vector.broadcast %45 : f32 to vector<16x132xf32>
    %48 = arith.mulf %47, %46 : vector<16x132xf32>
    %49 = arith.addf %44, %48 : vector<16x132xf32>
    %c2_14 = arith.constant 2 : index
    %c1_15 = arith.constant 1 : index
    %50 = memref.load %arg1[%c2_14, %c1_15] : memref<7x7xf32, #tpu.memory_space<smem>>
    %51 = vector.extract_strided_slice %39 {offsets = [2, 0], sizes = [16, 132], strides = [1, 1]} : vector<22x132xf32> to vector<16x132xf32>
    %52 = vector.broadcast %50 : f32 to vector<16x132xf32>
    %53 = arith.mulf %52, %51 : vector<16x132xf32>
    %54 = arith.addf %49, %53 : vector<16x132xf32>
    %c3_16 = arith.constant 3 : index
    %c1_17 = arith.constant 1 : index
    %55 = memref.load %arg1[%c3_16, %c1_17] : memref<7x7xf32, #tpu.memory_space<smem>>
    %56 = vector.extract_strided_slice %39 {offsets = [3, 0], sizes = [16, 132], strides = [1, 1]} : vector<22x132xf32> to vector<16x132xf32>
    %57 = vector.broadcast %55 : f32 to vector<16x132xf32>
    %58 = arith.mulf %57, %56 : vector<16x132xf32>
    %59 = arith.addf %54, %58 : vector<16x132xf32>
    %c4_18 = arith.constant 4 : index
    %c1_19 = arith.constant 1 : index
    %60 = memref.load %arg1[%c4_18, %c1_19] : memref<7x7xf32, #tpu.memory_space<smem>>
    %61 = vector.extract_strided_slice %39 {offsets = [4, 0], sizes = [16, 132], strides = [1, 1]} : vector<22x132xf32> to vector<16x132xf32>
    %62 = vector.broadcast %60 : f32 to vector<16x132xf32>
    %63 = arith.mulf %62, %61 : vector<16x132xf32>
    %64 = arith.addf %59, %63 : vector<16x132xf32>
    %c5_20 = arith.constant 5 : index
    %c1_21 = arith.constant 1 : index
    %65 = memref.load %arg1[%c5_20, %c1_21] : memref<7x7xf32, #tpu.memory_space<smem>>
    %66 = vector.extract_strided_slice %39 {offsets = [5, 0], sizes = [16, 132], strides = [1, 1]} : vector<22x132xf32> to vector<16x132xf32>
    %67 = vector.broadcast %65 : f32 to vector<16x132xf32>
    %68 = arith.mulf %67, %66 : vector<16x132xf32>
    %69 = arith.addf %64, %68 : vector<16x132xf32>
    %c6_22 = arith.constant 6 : index
    %c1_23 = arith.constant 1 : index
    %70 = memref.load %arg1[%c6_22, %c1_23] : memref<7x7xf32, #tpu.memory_space<smem>>
    %71 = vector.extract_strided_slice %39 {offsets = [6, 0], sizes = [16, 132], strides = [1, 1]} : vector<22x132xf32> to vector<16x132xf32>
    %72 = vector.broadcast %70 : f32 to vector<16x132xf32>
    %73 = arith.mulf %72, %71 : vector<16x132xf32>
    %74 = arith.addf %69, %73 : vector<16x132xf32>
    %75 = vector.extract_strided_slice %1 {offsets = [0, 2], sizes = [22, 132], strides = [1, 1]} : vector<22x256xf32> to vector<22x132xf32>
    %c0_24 = arith.constant 0 : index
    %c2_25 = arith.constant 2 : index
    %76 = memref.load %arg1[%c0_24, %c2_25] : memref<7x7xf32, #tpu.memory_space<smem>>
    %77 = vector.extract_strided_slice %75 {offsets = [0, 0], sizes = [16, 132], strides = [1, 1]} : vector<22x132xf32> to vector<16x132xf32>
    %78 = vector.broadcast %76 : f32 to vector<16x132xf32>
    %79 = arith.mulf %78, %77 : vector<16x132xf32>
    %80 = arith.addf %74, %79 : vector<16x132xf32>
    %c1_26 = arith.constant 1 : index
    %c2_27 = arith.constant 2 : index
    %81 = memref.load %arg1[%c1_26, %c2_27] : memref<7x7xf32, #tpu.memory_space<smem>>
    %82 = vector.extract_strided_slice %75 {offsets = [1, 0], sizes = [16, 132], strides = [1, 1]} : vector<22x132xf32> to vector<16x132xf32>
    %83 = vector.broadcast %81 : f32 to vector<16x132xf32>
    %84 = arith.mulf %83, %82 : vector<16x132xf32>
    %85 = arith.addf %80, %84 : vector<16x132xf32>
    %c2_28 = arith.constant 2 : index
    %c2_29 = arith.constant 2 : index
    %86 = memref.load %arg1[%c2_28, %c2_29] : memref<7x7xf32, #tpu.memory_space<smem>>
    %87 = vector.extract_strided_slice %75 {offsets = [2, 0], sizes = [16, 132], strides = [1, 1]} : vector<22x132xf32> to vector<16x132xf32>
    %88 = vector.broadcast %86 : f32 to vector<16x132xf32>
    %89 = arith.mulf %88, %87 : vector<16x132xf32>
    %90 = arith.addf %85, %89 : vector<16x132xf32>
    %c3_30 = arith.constant 3 : index
    %c2_31 = arith.constant 2 : index
    %91 = memref.load %arg1[%c3_30, %c2_31] : memref<7x7xf32, #tpu.memory_space<smem>>
    %92 = vector.extract_strided_slice %75 {offsets = [3, 0], sizes = [16, 132], strides = [1, 1]} : vector<22x132xf32> to vector<16x132xf32>
    %93 = vector.broadcast %91 : f32 to vector<16x132xf32>
    %94 = arith.mulf %93, %92 : vector<16x132xf32>
    %95 = arith.addf %90, %94 : vector<16x132xf32>
    %c4_32 = arith.constant 4 : index
    %c2_33 = arith.constant 2 : index
    %96 = memref.load %arg1[%c4_32, %c2_33] : memref<7x7xf32, #tpu.memory_space<smem>>
    %97 = vector.extract_strided_slice %75 {offsets = [4, 0], sizes = [16, 132], strides = [1, 1]} : vector<22x132xf32> to vector<16x132xf32>
    %98 = vector.broadcast %96 : f32 to vector<16x132xf32>
    %99 = arith.mulf %98, %97 : vector<16x132xf32>
    %100 = arith.addf %95, %99 : vector<16x132xf32>
    %c5_34 = arith.constant 5 : index
    %c2_35 = arith.constant 2 : index
    %101 = memref.load %arg1[%c5_34, %c2_35] : memref<7x7xf32, #tpu.memory_space<smem>>
    %102 = vector.extract_strided_slice %75 {offsets = [5, 0], sizes = [16, 132], strides = [1, 1]} : vector<22x132xf32> to vector<16x132xf32>
    %103 = vector.broadcast %101 : f32 to vector<16x132xf32>
    %104 = arith.mulf %103, %102 : vector<16x132xf32>
    %105 = arith.addf %100, %104 : vector<16x132xf32>
    %c6_36 = arith.constant 6 : index
    %c2_37 = arith.constant 2 : index
    %106 = memref.load %arg1[%c6_36, %c2_37] : memref<7x7xf32, #tpu.memory_space<smem>>
    %107 = vector.extract_strided_slice %75 {offsets = [6, 0], sizes = [16, 132], strides = [1, 1]} : vector<22x132xf32> to vector<16x132xf32>
    %108 = vector.broadcast %106 : f32 to vector<16x132xf32>
    %109 = arith.mulf %108, %107 : vector<16x132xf32>
    %110 = arith.addf %105, %109 : vector<16x132xf32>
    %111 = vector.extract_strided_slice %1 {offsets = [0, 3], sizes = [22, 132], strides = [1, 1]} : vector<22x256xf32> to vector<22x132xf32>
    %c0_38 = arith.constant 0 : index
    %c3_39 = arith.constant 3 : index
    %112 = memref.load %arg1[%c0_38, %c3_39] : memref<7x7xf32, #tpu.memory_space<smem>>
    %113 = vector.extract_strided_slice %111 {offsets = [0, 0], sizes = [16, 132], strides = [1, 1]} : vector<22x132xf32> to vector<16x132xf32>
    %114 = vector.broadcast %112 : f32 to vector<16x132xf32>
    %115 = arith.mulf %114, %113 : vector<16x132xf32>
    %116 = arith.addf %110, %115 : vector<16x132xf32>
    %c1_40 = arith.constant 1 : index
    %c3_41 = arith.constant 3 : index
    %117 = memref.load %arg1[%c1_40, %c3_41] : memref<7x7xf32, #tpu.memory_space<smem>>
    %118 = vector.extract_strided_slice %111 {offsets = [1, 0], sizes = [16, 132], strides = [1, 1]} : vector<22x132xf32> to vector<16x132xf32>
    %119 = vector.broadcast %117 : f32 to vector<16x132xf32>
    %120 = arith.mulf %119, %118 : vector<16x132xf32>
    %121 = arith.addf %116, %120 : vector<16x132xf32>
    %c2_42 = arith.constant 2 : index
    %c3_43 = arith.constant 3 : index
    %122 = memref.load %arg1[%c2_42, %c3_43] : memref<7x7xf32, #tpu.memory_space<smem>>
    %123 = vector.extract_strided_slice %111 {offsets = [2, 0], sizes = [16, 132], strides = [1, 1]} : vector<22x132xf32> to vector<16x132xf32>
    %124 = vector.broadcast %122 : f32 to vector<16x132xf32>
    %125 = arith.mulf %124, %123 : vector<16x132xf32>
    %126 = arith.addf %121, %125 : vector<16x132xf32>
    %c3_44 = arith.constant 3 : index
    %c3_45 = arith.constant 3 : index
    %127 = memref.load %arg1[%c3_44, %c3_45] : memref<7x7xf32, #tpu.memory_space<smem>>
    %128 = vector.extract_strided_slice %111 {offsets = [3, 0], sizes = [16, 132], strides = [1, 1]} : vector<22x132xf32> to vector<16x132xf32>
    %129 = vector.broadcast %127 : f32 to vector<16x132xf32>
    %130 = arith.mulf %129, %128 : vector<16x132xf32>
    %131 = arith.addf %126, %130 : vector<16x132xf32>
    %c4_46 = arith.constant 4 : index
    %c3_47 = arith.constant 3 : index
    %132 = memref.load %arg1[%c4_46, %c3_47] : memref<7x7xf32, #tpu.memory_space<smem>>
    %133 = vector.extract_strided_slice %111 {offsets = [4, 0], sizes = [16, 132], strides = [1, 1]} : vector<22x132xf32> to vector<16x132xf32>
    %134 = vector.broadcast %132 : f32 to vector<16x132xf32>
    %135 = arith.mulf %134, %133 : vector<16x132xf32>
    %136 = arith.addf %131, %135 : vector<16x132xf32>
    %c5_48 = arith.constant 5 : index
    %c3_49 = arith.constant 3 : index
    %137 = memref.load %arg1[%c5_48, %c3_49] : memref<7x7xf32, #tpu.memory_space<smem>>
    %138 = vector.extract_strided_slice %111 {offsets = [5, 0], sizes = [16, 132], strides = [1, 1]} : vector<22x132xf32> to vector<16x132xf32>
    %139 = vector.broadcast %137 : f32 to vector<16x132xf32>
    %140 = arith.mulf %139, %138 : vector<16x132xf32>
    %141 = arith.addf %136, %140 : vector<16x132xf32>
    %c6_50 = arith.constant 6 : index
    %c3_51 = arith.constant 3 : index
    %142 = memref.load %arg1[%c6_50, %c3_51] : memref<7x7xf32, #tpu.memory_space<smem>>
    %143 = vector.extract_strided_slice %111 {offsets = [6, 0], sizes = [16, 132], strides = [1, 1]} : vector<22x132xf32> to vector<16x132xf32>
    %144 = vector.broadcast %142 : f32 to vector<16x132xf32>
    %145 = arith.mulf %144, %143 : vector<16x132xf32>
    %146 = arith.addf %141, %145 : vector<16x132xf32>
    %147 = vector.extract_strided_slice %1 {offsets = [0, 4], sizes = [22, 132], strides = [1, 1]} : vector<22x256xf32> to vector<22x132xf32>
    %c0_52 = arith.constant 0 : index
    %c4_53 = arith.constant 4 : index
    %148 = memref.load %arg1[%c0_52, %c4_53] : memref<7x7xf32, #tpu.memory_space<smem>>
    %149 = vector.extract_strided_slice %147 {offsets = [0, 0], sizes = [16, 132], strides = [1, 1]} : vector<22x132xf32> to vector<16x132xf32>
    %150 = vector.broadcast %148 : f32 to vector<16x132xf32>
    %151 = arith.mulf %150, %149 : vector<16x132xf32>
    %152 = arith.addf %146, %151 : vector<16x132xf32>
    %c1_54 = arith.constant 1 : index
    %c4_55 = arith.constant 4 : index
    %153 = memref.load %arg1[%c1_54, %c4_55] : memref<7x7xf32, #tpu.memory_space<smem>>
    %154 = vector.extract_strided_slice %147 {offsets = [1, 0], sizes = [16, 132], strides = [1, 1]} : vector<22x132xf32> to vector<16x132xf32>
    %155 = vector.broadcast %153 : f32 to vector<16x132xf32>
    %156 = arith.mulf %155, %154 : vector<16x132xf32>
    %157 = arith.addf %152, %156 : vector<16x132xf32>
    %c2_56 = arith.constant 2 : index
    %c4_57 = arith.constant 4 : index
    %158 = memref.load %arg1[%c2_56, %c4_57] : memref<7x7xf32, #tpu.memory_space<smem>>
    %159 = vector.extract_strided_slice %147 {offsets = [2, 0], sizes = [16, 132], strides = [1, 1]} : vector<22x132xf32> to vector<16x132xf32>
    %160 = vector.broadcast %158 : f32 to vector<16x132xf32>
    %161 = arith.mulf %160, %159 : vector<16x132xf32>
    %162 = arith.addf %157, %161 : vector<16x132xf32>
    %c3_58 = arith.constant 3 : index
    %c4_59 = arith.constant 4 : index
    %163 = memref.load %arg1[%c3_58, %c4_59] : memref<7x7xf32, #tpu.memory_space<smem>>
    %164 = vector.extract_strided_slice %147 {offsets = [3, 0], sizes = [16, 132], strides = [1, 1]} : vector<22x132xf32> to vector<16x132xf32>
    %165 = vector.broadcast %163 : f32 to vector<16x132xf32>
    %166 = arith.mulf %165, %164 : vector<16x132xf32>
    %167 = arith.addf %162, %166 : vector<16x132xf32>
    %c4_60 = arith.constant 4 : index
    %c4_61 = arith.constant 4 : index
    %168 = memref.load %arg1[%c4_60, %c4_61] : memref<7x7xf32, #tpu.memory_space<smem>>
    %169 = vector.extract_strided_slice %147 {offsets = [4, 0], sizes = [16, 132], strides = [1, 1]} : vector<22x132xf32> to vector<16x132xf32>
    %170 = vector.broadcast %168 : f32 to vector<16x132xf32>
    %171 = arith.mulf %170, %169 : vector<16x132xf32>
    %172 = arith.addf %167, %171 : vector<16x132xf32>
    %c5_62 = arith.constant 5 : index
    %c4_63 = arith.constant 4 : index
    %173 = memref.load %arg1[%c5_62, %c4_63] : memref<7x7xf32, #tpu.memory_space<smem>>
    %174 = vector.extract_strided_slice %147 {offsets = [5, 0], sizes = [16, 132], strides = [1, 1]} : vector<22x132xf32> to vector<16x132xf32>
    %175 = vector.broadcast %173 : f32 to vector<16x132xf32>
    %176 = arith.mulf %175, %174 : vector<16x132xf32>
    %177 = arith.addf %172, %176 : vector<16x132xf32>
    %c6_64 = arith.constant 6 : index
    %c4_65 = arith.constant 4 : index
    %178 = memref.load %arg1[%c6_64, %c4_65] : memref<7x7xf32, #tpu.memory_space<smem>>
    %179 = vector.extract_strided_slice %147 {offsets = [6, 0], sizes = [16, 132], strides = [1, 1]} : vector<22x132xf32> to vector<16x132xf32>
    %180 = vector.broadcast %178 : f32 to vector<16x132xf32>
    %181 = arith.mulf %180, %179 : vector<16x132xf32>
    %182 = arith.addf %177, %181 : vector<16x132xf32>
    %183 = vector.extract_strided_slice %1 {offsets = [0, 5], sizes = [22, 132], strides = [1, 1]} : vector<22x256xf32> to vector<22x132xf32>
    %c0_66 = arith.constant 0 : index
    %c5_67 = arith.constant 5 : index
    %184 = memref.load %arg1[%c0_66, %c5_67] : memref<7x7xf32, #tpu.memory_space<smem>>
    %185 = vector.extract_strided_slice %183 {offsets = [0, 0], sizes = [16, 132], strides = [1, 1]} : vector<22x132xf32> to vector<16x132xf32>
    %186 = vector.broadcast %184 : f32 to vector<16x132xf32>
    %187 = arith.mulf %186, %185 : vector<16x132xf32>
    %188 = arith.addf %182, %187 : vector<16x132xf32>
    %c1_68 = arith.constant 1 : index
    %c5_69 = arith.constant 5 : index
    %189 = memref.load %arg1[%c1_68, %c5_69] : memref<7x7xf32, #tpu.memory_space<smem>>
    %190 = vector.extract_strided_slice %183 {offsets = [1, 0], sizes = [16, 132], strides = [1, 1]} : vector<22x132xf32> to vector<16x132xf32>
    %191 = vector.broadcast %189 : f32 to vector<16x132xf32>
    %192 = arith.mulf %191, %190 : vector<16x132xf32>
    %193 = arith.addf %188, %192 : vector<16x132xf32>
    %c2_70 = arith.constant 2 : index
    %c5_71 = arith.constant 5 : index
    %194 = memref.load %arg1[%c2_70, %c5_71] : memref<7x7xf32, #tpu.memory_space<smem>>
    %195 = vector.extract_strided_slice %183 {offsets = [2, 0], sizes = [16, 132], strides = [1, 1]} : vector<22x132xf32> to vector<16x132xf32>
    %196 = vector.broadcast %194 : f32 to vector<16x132xf32>
    %197 = arith.mulf %196, %195 : vector<16x132xf32>
    %198 = arith.addf %193, %197 : vector<16x132xf32>
    %c3_72 = arith.constant 3 : index
    %c5_73 = arith.constant 5 : index
    %199 = memref.load %arg1[%c3_72, %c5_73] : memref<7x7xf32, #tpu.memory_space<smem>>
    %200 = vector.extract_strided_slice %183 {offsets = [3, 0], sizes = [16, 132], strides = [1, 1]} : vector<22x132xf32> to vector<16x132xf32>
    %201 = vector.broadcast %199 : f32 to vector<16x132xf32>
    %202 = arith.mulf %201, %200 : vector<16x132xf32>
    %203 = arith.addf %198, %202 : vector<16x132xf32>
    %c4_74 = arith.constant 4 : index
    %c5_75 = arith.constant 5 : index
    %204 = memref.load %arg1[%c4_74, %c5_75] : memref<7x7xf32, #tpu.memory_space<smem>>
    %205 = vector.extract_strided_slice %183 {offsets = [4, 0], sizes = [16, 132], strides = [1, 1]} : vector<22x132xf32> to vector<16x132xf32>
    %206 = vector.broadcast %204 : f32 to vector<16x132xf32>
    %207 = arith.mulf %206, %205 : vector<16x132xf32>
    %208 = arith.addf %203, %207 : vector<16x132xf32>
    %c5_76 = arith.constant 5 : index
    %c5_77 = arith.constant 5 : index
    %209 = memref.load %arg1[%c5_76, %c5_77] : memref<7x7xf32, #tpu.memory_space<smem>>
    %210 = vector.extract_strided_slice %183 {offsets = [5, 0], sizes = [16, 132], strides = [1, 1]} : vector<22x132xf32> to vector<16x132xf32>
    %211 = vector.broadcast %209 : f32 to vector<16x132xf32>
    %212 = arith.mulf %211, %210 : vector<16x132xf32>
    %213 = arith.addf %208, %212 : vector<16x132xf32>
    %c6_78 = arith.constant 6 : index
    %c5_79 = arith.constant 5 : index
    %214 = memref.load %arg1[%c6_78, %c5_79] : memref<7x7xf32, #tpu.memory_space<smem>>
    %215 = vector.extract_strided_slice %183 {offsets = [6, 0], sizes = [16, 132], strides = [1, 1]} : vector<22x132xf32> to vector<16x132xf32>
    %216 = vector.broadcast %214 : f32 to vector<16x132xf32>
    %217 = arith.mulf %216, %215 : vector<16x132xf32>
    %218 = arith.addf %213, %217 : vector<16x132xf32>
    %219 = vector.extract_strided_slice %1 {offsets = [0, 6], sizes = [22, 132], strides = [1, 1]} : vector<22x256xf32> to vector<22x132xf32>
    %c0_80 = arith.constant 0 : index
    %c6_81 = arith.constant 6 : index
    %220 = memref.load %arg1[%c0_80, %c6_81] : memref<7x7xf32, #tpu.memory_space<smem>>
    %221 = vector.extract_strided_slice %219 {offsets = [0, 0], sizes = [16, 132], strides = [1, 1]} : vector<22x132xf32> to vector<16x132xf32>
    %222 = vector.broadcast %220 : f32 to vector<16x132xf32>
    %223 = arith.mulf %222, %221 : vector<16x132xf32>
    %224 = arith.addf %218, %223 : vector<16x132xf32>
    %c1_82 = arith.constant 1 : index
    %c6_83 = arith.constant 6 : index
    %225 = memref.load %arg1[%c1_82, %c6_83] : memref<7x7xf32, #tpu.memory_space<smem>>
    %226 = vector.extract_strided_slice %219 {offsets = [1, 0], sizes = [16, 132], strides = [1, 1]} : vector<22x132xf32> to vector<16x132xf32>
    %227 = vector.broadcast %225 : f32 to vector<16x132xf32>
    %228 = arith.mulf %227, %226 : vector<16x132xf32>
    %229 = arith.addf %224, %228 : vector<16x132xf32>
    %c2_84 = arith.constant 2 : index
    %c6_85 = arith.constant 6 : index
    %230 = memref.load %arg1[%c2_84, %c6_85] : memref<7x7xf32, #tpu.memory_space<smem>>
    %231 = vector.extract_strided_slice %219 {offsets = [2, 0], sizes = [16, 132], strides = [1, 1]} : vector<22x132xf32> to vector<16x132xf32>
    %232 = vector.broadcast %230 : f32 to vector<16x132xf32>
    %233 = arith.mulf %232, %231 : vector<16x132xf32>
    %234 = arith.addf %229, %233 : vector<16x132xf32>
    %c3_86 = arith.constant 3 : index
    %c6_87 = arith.constant 6 : index
    %235 = memref.load %arg1[%c3_86, %c6_87] : memref<7x7xf32, #tpu.memory_space<smem>>
    %236 = vector.extract_strided_slice %219 {offsets = [3, 0], sizes = [16, 132], strides = [1, 1]} : vector<22x132xf32> to vector<16x132xf32>
    %237 = vector.broadcast %235 : f32 to vector<16x132xf32>
    %238 = arith.mulf %237, %236 : vector<16x132xf32>
    %239 = arith.addf %234, %238 : vector<16x132xf32>
    %c4_88 = arith.constant 4 : index
    %c6_89 = arith.constant 6 : index
    %240 = memref.load %arg1[%c4_88, %c6_89] : memref<7x7xf32, #tpu.memory_space<smem>>
    %241 = vector.extract_strided_slice %219 {offsets = [4, 0], sizes = [16, 132], strides = [1, 1]} : vector<22x132xf32> to vector<16x132xf32>
    %242 = vector.broadcast %240 : f32 to vector<16x132xf32>
    %243 = arith.mulf %242, %241 : vector<16x132xf32>
    %244 = arith.addf %239, %243 : vector<16x132xf32>
    %c5_90 = arith.constant 5 : index
    %c6_91 = arith.constant 6 : index
    %245 = memref.load %arg1[%c5_90, %c6_91] : memref<7x7xf32, #tpu.memory_space<smem>>
    %246 = vector.extract_strided_slice %219 {offsets = [5, 0], sizes = [16, 132], strides = [1, 1]} : vector<22x132xf32> to vector<16x132xf32>
    %247 = vector.broadcast %245 : f32 to vector<16x132xf32>
    %248 = arith.mulf %247, %246 : vector<16x132xf32>
    %249 = arith.addf %244, %248 : vector<16x132xf32>
    %c6_92 = arith.constant 6 : index
    %c6_93 = arith.constant 6 : index
    %250 = memref.load %arg1[%c6_92, %c6_93] : memref<7x7xf32, #tpu.memory_space<smem>>
    %251 = vector.extract_strided_slice %219 {offsets = [6, 0], sizes = [16, 132], strides = [1, 1]} : vector<22x132xf32> to vector<16x132xf32>
    %252 = vector.broadcast %250 : f32 to vector<16x132xf32>
    %253 = arith.mulf %252, %251 : vector<16x132xf32>
    %254 = arith.addf %249, %253 : vector<16x132xf32>
    %c0_94 = arith.constant 0 : index
    %c0_95 = arith.constant 0 : index
    %c0_96 = arith.constant 0 : index
    %255 = vector.load %arg3[%c0_94, %c0_95, %c0_96] : memref<1x16x132xf32, #tpu.memory_space<vmem>>, vector<1x16x132xf32>
    %256 = vector.shape_cast %255 : vector<1x16x132xf32> to vector<16x132xf32>
    %257 = vector.shape_cast %254 : vector<16x132xf32> to vector<1x16x132xf32>
    tpu.vector_store %arg3[%c0_94, %c0_95, %c0_96], %257 {strides = array<i32>} : memref<1x16x132xf32, #tpu.memory_space<vmem>>, vector<1x16x132xf32>,
    return
  }
  func.func @transform_0(%arg0: i32) -> (i32, i32) {
    %c0_i32 = arith.constant 0 : i32
    %c0_i32_0 = arith.constant 0 : i32
    %c0_i32_1 = arith.constant 0 : i32
    return %c0_i32, %c0_i32_0 : i32, i32
  }
  func.func @transform_1(%arg0: i32) -> (i32, i32, i32) {
    %c0_i32 = arith.constant 0 : i32
    %c0_i32_0 = arith.constant 0 : i32
    %c0_i32_1 = arith.constant 0 : i32
    return %arg0, %c0_i32, %c0_i32_0 : i32, i32, i32
  }
  func.func @transform_2(%arg0: i32) -> (i32, i32, i32) {
    %c0_i32 = arith.constant 0 : i32
    %c0_i32_0 = arith.constant 0 : i32
    %c0_i32_1 = arith.constant 0 : i32
    return %arg0, %c0_i32, %c0_i32_0 : i32, i32, i32
  }
}

</mosaic_0001>

<bundles_post_ra>
// kernel: tpu_custom_call.1
= control target key start
LH: loop header
LB: loop body
LE: loop exit
PB: predicated region body
PF: predicated region fallthrough
CT: control target
= control target key end

     0   :  { %7 = vsyncpa [#allocation4], 0  ;;  %s3455_s0 = inlined_call_operand.vmem [shape: f32[7,7], index: 0, kind: input, shape index: {}]   ;;  %s3456_s1 = inlined_call_operand.vmem [shape: f32[1,22,256], index: 1, kind: input, shape index: {}]   ;;  %s3457_s2 = inlined_call_operand.hbm [shape: f32[1,16,132], index: 2, kind: output, shape index: {}]  }
   0x1   :  { %8 = vsyncpa [#allocation3], 0  ;;  %s15_s11 = sshll.u32 %s3455_s0, 4  ;;  %s16_s11 = int_to_ptr.vmem [resolvable:$true] %s15_s11 }
   0x2   :  { %s2017_s12 = scalar_lea.vmem %s16_s11, 128  ;;  %p2022_p1 = scmp.lt.s32.totalorder %s16_s11, %s16_s11 }
   0x3   :  { %p2018_p0 = scmp.ne.s32.totalorder %s16_s11, %s2017_s12  ;;  %p2023_p2 = scmp.lt.s32.totalorder %s2017_s12, %s2017_s12 }
   0x5   :  { %p2024_p3 = por %p2023_p2, %p2022_p1 }
   0x7   :  { %p2025_p4 = pnand %p2024_p3, %p2018_p0 }
   0x9   :  { %2028 = shalt.err (!%p2025_p4)
}
   0xa   :  { %s2055_s13 = smov [#allocation2]  }
   0xb   :  { %18 = dma.vmem_to_smem %s16_s11, 128, %s2055_s13, [#allocation4]  }
   0xc   :  { %2051 = dma.done.wait [#allocation4], 128  }
   0xd   :  { %2052 = vsyncadd [#allocation4], 4294967168 }
   0xe   :  { %24 = sfence }
   0xf   :  { %s1953_s14 = sld [smem:[#allocation2 + $0x1]]  ;;  %v2086_v0 = vld [vmem:[%s3456_s1 + $0x10] sm:$0xff]  ;;  %v2091_v1 = vld [vmem:[%s3456_s1] sm:$0xff]  ;;  %v2096_v2 = vld [vmem:[%s3456_s1 + $0x18] sm:$0xff]  ;;  %s2056_s29 = smov 127   ;;  %vm55_vm0 = vcmask 1046528  }
  0x10   :  { %s1954_s15 = sld [smem:[#allocation2 + $0x81]]  ;;  %v2101_v3 = vld [vmem:[%s3456_s1 + $0x8] sm:$0xff]  ;;  %v2113_v8 = vld [vmem:[%s3456_s1 + $0x20] sm:$0x3f]  ;;  %vm88_vm1 = vcmask 1045504   ;;  %vm121_vm2 = vcmask 1044480  }
  0x11   :  { %s1955_s16 = sld [smem:[#allocation2 + $0x101]]  ;;  %v2108_v7 = vld [vmem:[%s3456_s1 + $0x28] sm:$0x3f]  ;;  %vm154_vm3 = vcmask 1043456   ;;  %vm187_vm4 = vcmask 1042432   ;;  %s1960_s5 = sld [smem:[#allocation2 + $0x2]] }
  0x12   :  { %s1956_s28 = sld [smem:[#allocation2 + $0x181]]  ;;  %vm220_vm5 = vcmask 1041408   ;;  %s1961_s6 = sld [smem:[#allocation2 + $0x82]]  ;;  %vm257_vm6 = vcmask 1039360   ;;  %vm538_vm7 = vcmask 1031168   ;;  %vm819_vm8 = vcmask 1022976  }
  0x13   :  { %s1957_s30 = sld [smem:[#allocation2 + $0x201]]  ;;  %s1962_s7 = sld [smem:[#allocation2 + $0x102]]  ;;  %vm1100_vm9 = vcmask 1014784   ;;  %vm1381_vm10 = vcmask 1006592   ;;  %vm1662_vm11 = vcmask 998400   ;;  %vm1926_vm12 = vcmask 31744  }
  0x14   :  { %s1958_s3 = sld [smem:[#allocation2 + $0x281]]  ;;  %s2057_s8 = smov 126  }
  0x15   :  { %v240_v4 = vstv %s1953_s14  ;;  %s1959_s4 = sld [smem:[#allocation2 + $0x301]]  ;;  %s1963_s9 = sld [smem:[#allocation2 + $0x182]] }
  0x16   :  { %v243_v5 = vmul.f32 %v240_v4, %v2086_v0  ;;  %v241_v6 = vmul.f32 %v240_v4, %v2091_v1  ;;  %v244_v9 = vmul.f32 %v240_v4, %v2096_v2  ;;  %v242_v10 = vmul.f32 %v240_v4, %v2101_v3  ;;  %s1964_s10 = sld [smem:[#allocation2 + $0x202]]  ;;  %s1967_s13 = sld [smem:[#allocation2 + $0x3]] }
  0x17   :  { %v269_v11 = vstv %s1954_s15  ;;  %v311_v18 = vstv %s1955_s16  ;;  %s1965_s11 = sld [smem:[#allocation2 + $0x282]]  ;;  %s1968_s14 = sld [smem:[#allocation2 + $0x83]] }
  0x18   :  { %253 = vrot.lane.b32.xlu1 %v243_v5, %s2056_s29  ;;  %249 = vrot.lane.b32.xlu0 %v241_v6, %s2056_s29  ;;  %v271_v12 = vmul.f32 %v269_v11, %v2101_v3  ;;  %v273_v13 = vmul.f32 %v269_v11, %v2096_v2  ;;  %v270_v14 = vmul.f32 %v269_v11, %v2091_v1  ;;  %v353_v31 = vstv %s1956_s28  ;;  %s1966_s12 = sld [smem:[#allocation2 + $0x302]]  ;;  %s1969_s15 = sld [smem:[#allocation2 + $0x103]] }
  0x19   :  { %v272_v15 = vmul.f32 %v269_v11, %v2086_v0  ;;  %v275_v16 = vmul.f32 %v269_v11, %v2108_v7  ;;  %v274_v17 = vmul.f32 %v269_v11, %v2113_v8  ;;  %v313_v25 = vmul.f32 %v311_v18, %v2101_v3  ;;  %s2058_s16 = smov 125   ;;  %s1970_s17 = sld [smem:[#allocation2 + $0x183]] }
  0x1a   :  { %v285_v19 = vrot.slane %v271_v12, 1  ;;  %v286_v20 = vrot.slane %v273_v13, 1  ;;  %v282_v21 = vrot.slane %v270_v14, 1  ;;  %v315_v26 = vmul.f32 %v311_v18, %v2096_v2  ;;  %s1971_s18 = sld [smem:[#allocation2 + $0x203]]  ;;  %s1947_s0 = sld [smem:[#allocation2 + $0x80]] }
  0x1b   :  { %v283_v22 = vrot.slane %v272_v15, 1  ;;  %v290_v23 = vrot.slane %v275_v16, 1  ;;  %v288_v24 = vrot.slane %v274_v17, 1  ;;  %v312_v29 = vmul.f32 %v311_v18, %v2091_v1  ;;  %s1972_s19 = sld [smem:[#allocation2 + $0x283]]  ;;  %s2357_s20 = sld [smem:[#allocation2 + $0x100]] }
  0x1c   :  { %255 = vrot.lane.b32.xlu1 %v244_v9, %s2056_s29  ;;  %251 = vrot.lane.b32.xlu0 %v242_v10, %s2056_s29  ;;  %v287_v27 = vsel %vm55_vm0, %v285_v19, %v286_v20  ;;  %v314_v30 = vmul.f32 %v311_v18, %v2086_v0  ;;  %v327_v34 = vrot.slane %v313_v25, 2  ;;  %v328_v35 = vrot.slane %v315_v26, 2  ;;  %s2367_s21 = sld [smem:[#allocation2]]  ;;  %s2381_s23 = sld [smem:[#allocation2 + $0x303]] }
  0x1d   :  { %v284_v28 = vsel %vm55_vm0, %v282_v21, %v283_v22  ;;  %v291_v32 = vsel %vm55_vm0, %v286_v20, %v290_v23  ;;  %v289_v33 = vsel %vm55_vm0, %v283_v22, %v288_v24  ;;  %v324_v36 = vrot.slane %v312_v29, 2  ;;  %s2375_s22 = sld [smem:[#allocation2 + $0x180]]  ;;  %s2489_s27 = sld [smem:[#allocation2 + $0x4]] }
  0x1e   :  { %v325_v37 = vrot.slane %v314_v30, 2  ;;  %v317_v38 = vmul.f32 %v311_v18, %v2108_v7  ;;  %v316_v39 = vmul.f32 %v311_v18, %v2113_v8  ;;  %v355_v40 = vmul.f32 %v353_v31, %v2101_v3  ;;  %s2398_s24 = sld [smem:[#allocation2 + $0x200]]  ;;  %s2507_s28 = sld [smem:[#allocation2 + $0x84]] }
  0x1f   :  { %v357_v41 = vmul.f32 %v353_v31, %v2096_v2  ;;  %v354_v42 = vmul.f32 %v353_v31, %v2091_v1  ;;  %v356_v43 = vmul.f32 %v353_v31, %v2086_v0  ;;  %v329_v44 = vsel %vm88_vm1, %v327_v34, %v328_v35  ;;  %s2425_s25 = sld [smem:[#allocation2 + $0x280]] }
  0x20   :  { %294 = vrot.lane.b32.xlu1 %v287_v27, %s2056_s29  ;;  %292 = vrot.lane.b32.xlu0 %v284_v28, %s2056_s29  ;;  %v326_v45 = vsel %vm88_vm1, %v324_v36, %v325_v37  ;;  %v332_v46 = vrot.slane %v317_v38, 2  ;;  %v330_v47 = vrot.slane %v316_v39, 2  ;;  %v369_v48 = vrot.slane %v355_v40, 3  ;;  %s2453_s26 = sld [smem:[#allocation2 + $0x300]] }
  0x21   :  { %v359_v49 = vmul.f32 %v353_v31, %v2108_v7  ;;  %v370_v50 = vrot.slane %v357_v41, 3  ;;  %v366_v51 = vrot.slane %v354_v42, 3  ;;  %v367_v52 = vrot.slane %v356_v43, 3 }
  0x22   :  { %v358_v53 = vmul.f32 %v353_v31, %v2113_v8  ;;  %v333_v54 = vsel %vm88_vm1, %v328_v35, %v332_v46  ;;  %v331_v55 = vsel %vm88_vm1, %v325_v37, %v330_v47  ;;  %v395_v56 = vstv %s1957_s30 }
  0x23   :  { %v374_v57 = vrot.slane %v359_v49, 3  ;;  %v371_v58 = vsel %vm121_vm2, %v369_v48, %v370_v50  ;;  %v368_v59 = vsel %vm121_vm2, %v366_v51, %v367_v52  ;;  %v397_v61 = vmul.f32 %v395_v56, %v2101_v3 }
  0x24   :  { %298 = vrot.lane.b32.xlu1 %v291_v32, %s2056_s29  ;;  %296 = vrot.lane.b32.xlu0 %v289_v33, %s2056_s29  ;;  %v372_v60 = vrot.slane %v358_v53, 3  ;;  %v399_v62 = vmul.f32 %v395_v56, %v2096_v2  ;;  %v396_v63 = vmul.f32 %v395_v56, %v2091_v1  ;;  %v398_v4 = vmul.f32 %v395_v56, %v2086_v0 }
  0x25   :  { %v375_v5 = vsel %vm121_vm2, %v370_v50, %v374_v57  ;;  %v401_v9 = vmul.f32 %v395_v56, %v2108_v7  ;;  %v400_v10 = vmul.f32 %v395_v56, %v2113_v8  ;;  %v437_v11 = vstv %s1958_s3 }
  0x26   :  { %v373_v6 = vsel %vm121_vm2, %v367_v52, %v372_v60  ;;  %v411_v12 = vrot.slane %v397_v61, 4  ;;  %v412_v13 = vrot.slane %v399_v62, 4  ;;  %v408_v14 = vrot.slane %v396_v63, 4 }
  0x27   :  { %v409_v15 = vrot.slane %v398_v4, 4  ;;  %v416_v16 = vrot.slane %v401_v9, 4  ;;  %v414_v17 = vrot.slane %v400_v10, 4  ;;  %v439_v18 = vmul.f32 %v437_v11, %v2101_v3 }
  0x28   :  { %336 = vrot.lane.b32.xlu1 %v329_v44, %s2056_s29  ;;  %334 = vrot.lane.b32.xlu0 %v326_v45, %s2056_s29  ;;  %v441_v19 = vmul.f32 %v437_v11, %v2096_v2  ;;  %v413_v20 = vsel %vm154_vm3, %v411_v12, %v412_v13  ;;  %v438_v22 = vmul.f32 %v437_v11, %v2091_v1  ;;  %v479_v24 = vstv %s1959_s4 }
  0x29   :  { %v410_v21 = vsel %vm154_vm3, %v408_v14, %v409_v15  ;;  %v440_v23 = vmul.f32 %v437_v11, %v2086_v0  ;;  %v417_v25 = vsel %vm154_vm3, %v412_v13, %v416_v16  ;;  %v415_v26 = vsel %vm154_vm3, %v409_v15, %v414_v17 }
  0x2a   :  { %v453_v27 = vrot.slane %v439_v18, 5  ;;  %v443_v28 = vmul.f32 %v437_v11, %v2108_v7  ;;  %v454_v29 = vrot.slane %v441_v19, 5  ;;  %v450_v30 = vrot.slane %v438_v22, 5 }
  0x2b   :  { %v451_v31 = vrot.slane %v440_v23, 5  ;;  %v442_v32 = vmul.f32 %v437_v11, %v2113_v8  ;;  %v481_v34 = vmul.f32 %v479_v24, %v2101_v3  ;;  %v483_v35 = vmul.f32 %v479_v24, %v2096_v2 }
  0x2c   :  { %340 = vrot.lane.b32.xlu1 %v333_v54, %s2056_s29  ;;  %338 = vrot.lane.b32.xlu0 %v331_v55, %s2056_s29  ;;  %v458_v33 = vrot.slane %v443_v28, 5  ;;  %v480_v36 = vmul.f32 %v479_v24, %v2091_v1  ;;  %v455_v37 = vsel %vm187_vm4, %v453_v27, %v454_v29  ;;  %v482_v40 = vmul.f32 %v479_v24, %v2086_v0 }
  0x2d   :  { %v452_v38 = vsel %vm187_vm4, %v450_v30, %v451_v31  ;;  %v456_v39 = vrot.slane %v442_v32, 5  ;;  %v495_v42 = vrot.slane %v481_v34, 6  ;;  %v496_v43 = vrot.slane %v483_v35, 6 }
  0x2e   :  { %v459_v41 = vsel %vm187_vm4, %v454_v29, %v458_v33  ;;  %v492_v44 = vrot.slane %v480_v36, 6  ;;  %v493_v46 = vrot.slane %v482_v40, 6  ;;  %v485_v47 = vmul.f32 %v479_v24, %v2108_v7 }
  0x2f   :  { %v457_v45 = vsel %vm187_vm4, %v451_v31, %v456_v39  ;;  %v484_v48 = vmul.f32 %v479_v24, %v2113_v8  ;;  %v497_v49 = vsel %vm220_vm5, %v495_v42, %v496_v43  ;;  %v521_v55 = vstv %s1960_s5 }
  0x30   :  { %378 = vrot.lane.b32.xlu1 %v371_v58, %s2056_s29  ;;  %376 = vrot.lane.b32.xlu0 %v368_v59, %s2056_s29  ;;  %v494_v50 = vsel %vm220_vm5, %v492_v44, %v493_v46  ;;  %v500_v51 = vrot.slane %v485_v47, 6  ;;  %v550_v56 = vstv %s1961_s6  ;;  %v523_v57 = vmul.f32 %v521_v55, %v2101_v3 }
  0x31   :  { %v498_v52 = vrot.slane %v484_v48, 6  ;;  %v522_v58 = vmul.f32 %v521_v55, %v2091_v1  ;;  %v552_v59 = vmul.f32 %v550_v56, %v2101_v3  ;;  %v554_v60 = vmul.f32 %v550_v56, %v2096_v2 }
  0x32   :  { %v501_v53 = vsel %vm220_vm5, %v496_v43, %v500_v51  ;;  %v551_v61 = vmul.f32 %v550_v56, %v2091_v1  ;;  %v553_v62 = vmul.f32 %v550_v56, %v2086_v0  ;;  %v525_v63 = vmul.f32 %v521_v55, %v2096_v2 }
  0x33   :  { %v499_v54 = vsel %vm220_vm5, %v493_v46, %v498_v52  ;;  %v524_v4 = vmul.f32 %v521_v55, %v2086_v0  ;;  %v592_v9 = vstv %s1962_s7  ;;  %v566_v10 = vrot.slane %v552_v59, 1 }
  0x34   :  { %382 = vrot.lane.b32.xlu1 %v375_v5, %s2056_s29  ;;  %380 = vrot.lane.b32.xlu0 %v373_v6, %s2056_s29  ;;  %v556_v5 = vmul.f32 %v550_v56, %v2108_v7  ;;  %v555_v6 = vmul.f32 %v550_v56, %v2113_v8  ;;  %v567_v11 = vrot.slane %v554_v60, 1  ;;  %v563_v12 = vrot.slane %v551_v61, 1 }
  0x35   :  { %v564_v13 = vrot.slane %v553_v62, 1  ;;  %v594_v14 = vmul.f32 %v592_v9, %v2101_v3  ;;  %v596_v15 = vmul.f32 %v592_v9, %v2096_v2  ;;  %v593_v16 = vmul.f32 %v592_v9, %v2091_v1 }
  0x36   :  { %v595_v17 = vmul.f32 %v592_v9, %v2086_v0  ;;  %v568_v18 = vsel %vm55_vm0, %v566_v10, %v567_v11  ;;  %v597_v29 = vmul.f32 %v592_v9, %v2113_v8  ;;  %v634_v30 = vstv %s1963_s9 }
  0x37   :  { %v565_v19 = vsel %vm55_vm0, %v563_v12, %v564_v13  ;;  %v608_v22 = vrot.slane %v594_v14, 2  ;;  %v609_v23 = vrot.slane %v596_v15, 2  ;;  %v605_v24 = vrot.slane %v593_v16, 2 }
  0x38   :  { %420 = vrot.lane.b32.xlu1 %v413_v20, %s2056_s29  ;;  %418 = vrot.lane.b32.xlu0 %v410_v21, %s2056_s29  ;;  %v571_v20 = vrot.slane %v556_v5, 1  ;;  %v569_v21 = vrot.slane %v555_v6, 1  ;;  %v636_v34 = vmul.f32 %v634_v30, %v2101_v3  ;;  %v611_v35 = vrot.slane %v597_v29, 2 }
  0x39   :  { %v610_v31 = vsel %vm88_vm1, %v608_v22, %v609_v23  ;;  %v638_v36 = vmul.f32 %v634_v30, %v2096_v2  ;;  %v676_v39 = vstv %s1964_s10  ;;  %v640_v42 = vmul.f32 %v634_v30, %v2108_v7  ;;  %s2059_s10 = smov 124  }
  0x3a   :  { %v572_v27 = vsel %vm55_vm0, %v567_v11, %v571_v20  ;;  %v570_v28 = vsel %vm55_vm0, %v564_v13, %v569_v21  ;;  %v639_v43 = vmul.f32 %v634_v30, %v2113_v8  ;;  %v680_v51 = vmul.f32 %v676_v39, %v2096_v2 }
  0x3b   :  { %v655_v48 = vrot.slane %v640_v42, 3  ;;  %v679_v55 = vmul.f32 %v676_v39, %v2086_v0  ;;  %v718_v56 = vstv %s1965_s11  ;;  %s2061_s11 = smov 122  }
  0x3c   :  { %424 = vrot.lane.b32.xlu1 %v417_v25, %s2056_s29  ;;  %422 = vrot.lane.b32.xlu0 %v415_v26, %s2056_s29  ;;  %v606_v25 = vrot.slane %v595_v17, 2  ;;  %v598_v26 = vmul.f32 %v592_v9, %v2108_v7  ;;  %v693_v60 = vrot.slane %v680_v51, 4  ;;  %v720_v5 = vmul.f32 %v718_v56, %v2101_v3 }
  0x3d   :  { %v690_v62 = vrot.slane %v679_v55, 4  ;;  %v722_v9 = vmul.f32 %v718_v56, %v2096_v2  ;;  %v719_v10 = vmul.f32 %v718_v56, %v2091_v1  ;;  %v721_v14 = vmul.f32 %v718_v56, %v2086_v0 }
  0x3e   :  { %v607_v32 = vsel %vm88_vm1, %v605_v24, %v606_v25  ;;  %v613_v33 = vrot.slane %v598_v26, 2  ;;  %v612_v44 = vsel %vm88_vm1, %v606_v25, %v611_v35  ;;  %v734_v15 = vrot.slane %v720_v5, 5 }
  0x3f   :  { %v735_v16 = vrot.slane %v722_v9, 5  ;;  %v731_v17 = vrot.slane %v719_v10, 5  ;;  %v732_v22 = vrot.slane %v721_v14, 5 }
  0x40   :  { %462 = vrot.lane.b32.xlu1 %v455_v37, %s2056_s29  ;;  %460 = vrot.lane.b32.xlu0 %v452_v38, %s2056_s29  ;;  %v635_v37 = vmul.f32 %v634_v30, %v2091_v1  ;;  %v637_v38 = vmul.f32 %v634_v30, %v2086_v0  ;;  %v614_v40 = vsel %vm88_vm1, %v609_v23, %v613_v33  ;;  %v760_v23 = vstv %s1966_s12  ;;  %s3304_s12 = sld [smem:[#allocation2 + $0x186]] }
  0x41   :  { %v762_v26 = vmul.f32 %v760_v23, %v2101_v3  ;;  %v733_v29 = vsel %vm187_vm4, %v731_v17, %v732_v22  ;;  %v761_v30 = vmul.f32 %v760_v23, %v2091_v1 }
  0x42   :  { %v647_v46 = vrot.slane %v635_v37, 3  ;;  %v648_v47 = vrot.slane %v637_v38, 3  ;;  %v766_v38 = vmul.f32 %v760_v23, %v2108_v7 }
  0x44   :  { %466 = vrot.lane.b32.xlu1 %v459_v41, %s2056_s29  ;;  %464 = vrot.lane.b32.xlu0 %v457_v45, %s2056_s29  ;;  %v650_v41 = vrot.slane %v636_v34, 3  ;;  %v651_v45 = vrot.slane %v638_v36, 3  ;;  %v776_v34 = vrot.slane %v762_v26, 6  ;;  %v773_v36 = vrot.slane %v761_v30, 6 }
  0x45   :  { %v781_v42 = vrot.slane %v766_v38, 6  ;;  %v957_v38 = vstv %s1971_s18  ;;  %s2807_s18 = sld [smem:[#allocation2 + $0x304]] }
  0x46   :  { %v652_v52 = vsel %vm121_vm2, %v650_v41, %v651_v45 }
  0x48   :  { %504 = vrot.lane.b32.xlu1 %v497_v49, %s2056_s29  ;;  %502 = vrot.lane.b32.xlu0 %v494_v50, %s2056_s29  ;;  %v653_v49 = vrot.slane %v639_v43, 3  ;;  %v678_v50 = vmul.f32 %v676_v39, %v2101_v3 }
  0x4a   :  { %v692_v59 = vrot.slane %v678_v50, 4 }
  0x4c   :  { %508 = vrot.lane.b32.xlu1 %v501_v53, %s2056_s29  ;;  %506 = vrot.lane.b32.xlu0 %v499_v54, %s2056_s29  ;;  %v649_v53 = vsel %vm121_vm2, %v647_v46, %v648_v47  ;;  %v677_v54 = vmul.f32 %v676_v39, %v2091_v1  ;;  %v694_v6 = vsel %vm154_vm3, %v692_v59, %v693_v60  ;;  %v802_v46 = vstv %s1967_s13  ;;  %s2560_s29 = sld [smem:[#allocation2 + $0x104]] }
  0x4d   :  { %v805_v55 = vmul.f32 %v802_v46, %v2086_v0 }
  0x4e   :  { %v689_v61 = vrot.slane %v677_v54, 4  ;;  %v806_v54 = vmul.f32 %v802_v46, %v2096_v2 }
  0x50   :  { %532 = vrot.lane.b32.xlu1 %v523_v57, %s2057_s8  ;;  %530 = vrot.lane.b32.xlu0 %v522_v58, %s2057_s8  ;;  %v656_v57 = vsel %vm121_vm2, %v651_v45, %v655_v48  ;;  %v654_v58 = vsel %vm121_vm2, %v648_v47, %v653_v49  ;;  %v691_v11 = vsel %vm154_vm3, %v689_v61, %v690_v62  ;;  %v831_v47 = vstv %s1968_s14 }
  0x51   :  { %v804_v48 = vmul.f32 %v802_v46, %v2101_v3  ;;  %v803_v49 = vmul.f32 %v802_v46, %v2091_v1  ;;  %v833_v50 = vmul.f32 %v831_v47, %v2101_v3  ;;  %v835_v51 = vmul.f32 %v831_v47, %v2096_v2 }
  0x53   :  { %v847_v59 = vrot.slane %v833_v50, 1  ;;  %v961_v50 = vmul.f32 %v957_v38, %v2096_v2 }
  0x54   :  { %536 = vrot.lane.b32.xlu1 %v525_v63, %s2057_s8  ;;  %534 = vrot.lane.b32.xlu0 %v524_v4, %s2057_s8  ;;  %v682_v63 = vmul.f32 %v676_v39, %v2108_v7  ;;  %v681_v4 = vmul.f32 %v676_v39, %v2113_v8  ;;  %v765_v39 = vmul.f32 %v760_v23, %v2113_v8 }
  0x56   :  { %v697_v12 = vrot.slane %v682_v63, 4  ;;  %v695_v13 = vrot.slane %v681_v4, 4  ;;  %v779_v43 = vrot.slane %v765_v39, 6 }
  0x58   :  { %575 = vrot.lane.b32.xlu1 %v568_v18, %s2057_s8  ;;  %573 = vrot.lane.b32.xlu0 %v565_v19, %s2057_s8  ;;  %v724_v18 = vmul.f32 %v718_v56, %v2108_v7  ;;  %v723_v19 = vmul.f32 %v718_v56, %v2113_v8  ;;  %v698_v20 = vsel %vm154_vm3, %v693_v60, %v697_v12  ;;  %v848_v60 = vrot.slane %v835_v51, 1 }
  0x59   :  { %v696_v21 = vsel %vm154_vm3, %v690_v62, %v695_v13  ;;  %v837_v56 = vmul.f32 %v831_v47, %v2108_v7  ;;  %v958_v51 = vmul.f32 %v957_v38, %v2091_v1 }
  0x5a   :  { %v739_v24 = vrot.slane %v724_v18, 5  ;;  %v737_v25 = vrot.slane %v723_v19, 5 }
  0x5c   :  { %579 = vrot.lane.b32.xlu1 %v572_v27, %s2057_s8  ;;  %577 = vrot.lane.b32.xlu0 %v570_v28, %s2057_s8  ;;  %v764_v27 = vmul.f32 %v760_v23, %v2096_v2  ;;  %v736_v28 = vsel %vm187_vm4, %v734_v15, %v735_v16  ;;  %v738_v33 = vsel %vm187_vm4, %v732_v22, %v737_v25  ;;  %v915_v25 = vstv %s1970_s17  ;;  %s2766_s17 = sld [smem:[#allocation2 + $0x284]] }
  0x5d   :  { %v920_v46 = vmul.f32 %v915_v25, %v2113_v8 }
  0x5e   :  { %v777_v35 = vrot.slane %v764_v27, 6 }
  0x60   :  { %617 = vrot.lane.b32.xlu1 %v610_v31, %s2057_s8  ;;  %615 = vrot.lane.b32.xlu0 %v607_v32, %s2057_s8  ;;  %v763_v31 = vmul.f32 %v760_v23, %v2086_v0  ;;  %v740_v32 = vsel %vm187_vm4, %v735_v16, %v739_v24 }
  0x62   :  { %v774_v37 = vrot.slane %v763_v31, 6  ;;  %v917_v31 = vmul.f32 %v915_v25, %v2101_v3 }
  0x64   :  { %621 = vrot.lane.b32.xlu1 %v614_v40, %s2057_s8  ;;  %619 = vrot.lane.b32.xlu0 %v612_v44, %s2057_s8  ;;  %v778_v40 = vsel %vm220_vm5, %v776_v34, %v777_v35  ;;  %v775_v41 = vsel %vm220_vm5, %v773_v36, %v774_v37  ;;  %v782_v44 = vsel %vm220_vm5, %v777_v35, %v781_v42 }
  0x65   :  { %v780_v45 = vsel %vm220_vm5, %v774_v37, %v779_v43  ;;  %v916_v34 = vmul.f32 %v915_v25, %v2091_v1  ;;  %v918_v35 = vmul.f32 %v915_v25, %v2086_v0  ;;  %v921_v42 = vmul.f32 %v915_v25, %v2108_v7 }
  0x68   :  { %659 = vrot.lane.b32.xlu1 %v652_v52, %s2057_s8  ;;  %657 = vrot.lane.b32.xlu0 %v649_v53, %s2057_s8  ;;  %v832_v52 = vmul.f32 %v831_v47, %v2091_v1  ;;  %v834_v53 = vmul.f32 %v831_v47, %v2086_v0 }
  0x6a   :  { %v844_v61 = vrot.slane %v832_v52, 1  ;;  %v845_v62 = vrot.slane %v834_v53, 1  ;;  %v960_v52 = vmul.f32 %v957_v38, %v2086_v0 }
  0x6c   :  { %663 = vrot.lane.b32.xlu1 %v656_v57, %s2057_s8  ;;  %661 = vrot.lane.b32.xlu0 %v654_v58, %s2057_s8  ;;  %v836_v57 = vmul.f32 %v831_v47, %v2113_v8  ;;  %v873_v58 = vstv %s1969_s15  ;;  %v846_v12 = vsel %vm55_vm0, %v844_v61, %v845_v62  ;;  %v974_v61 = vrot.slane %v961_v50, 4  ;;  %s2661_s15 = sld [smem:[#allocation2 + $0x184]] }
  0x6d   :  { %v875_v5 = vmul.f32 %v873_v58, %v2101_v3  ;;  %v877_v10 = vmul.f32 %v873_v58, %v2096_v2  ;;  %v874_v13 = vmul.f32 %v873_v58, %v2091_v1  ;;  %v876_v14 = vmul.f32 %v873_v58, %v2086_v0 }
  0x6e   :  { %v850_v9 = vrot.slane %v836_v57, 1 }
  0x6f   :  { %v889_v17 = vrot.slane %v875_v5, 2  ;;  %v890_v19 = vrot.slane %v877_v10, 2  ;;  %v886_v23 = vrot.slane %v874_v13, 2  ;;  %v887_v24 = vrot.slane %v876_v14, 2 }
  0x70   :  { %701 = vrot.lane.b32.xlu1 %v694_v6, %s2057_s8  ;;  %699 = vrot.lane.b32.xlu0 %v691_v11, %s2057_s8  ;;  %v852_v6 = vrot.slane %v837_v56, 1  ;;  %v849_v11 = vsel %vm55_vm0, %v847_v59, %v848_v60  ;;  %v851_v22 = vsel %vm55_vm0, %v845_v62, %v850_v9  ;;  %v934_v56 = vrot.slane %v920_v46, 3 }
  0x71   :  { %v2373_v59 = vstv %s1947_s0  ;;  %v970_v62 = vrot.slane %v958_v51, 4  ;;  %v971_v5 = vrot.slane %v960_v52, 4  ;;  %v962_v9 = vmul.f32 %v957_v38, %v2113_v8  ;;  %s2893_s0 = sld [smem:[#allocation2 + $0x85]] }
  0x72   :  { %v853_v18 = vsel %vm55_vm0, %v848_v60, %v852_v6  ;;  %v963_v6 = vmul.f32 %v957_v38, %v2108_v7  ;;  %v999_v14 = vstv %s1972_s19  ;;  %s2906_s19 = sld [smem:[#allocation2 + $0x5]] }
  0x74   :  { %705 = vrot.lane.b32.xlu1 %v698_v20, %s2057_s8  ;;  %703 = vrot.lane.b32.xlu0 %v696_v21, %s2057_s8  ;;  %v879_v20 = vmul.f32 %v873_v58, %v2108_v7  ;;  %v878_v21 = vmul.f32 %v873_v58, %v2113_v8 }
  0x76   :  { %v892_v30 = vrot.slane %v878_v21, 2  ;;  %v972_v21 = vsel %vm154_vm3, %v970_v62, %v971_v5  ;;  %v2451_v62 = vstv %s2398_s24  ;;  %s3015_s24 = sld [smem:[#allocation2 + $0x285]] }
  0x78   :  { %743 = vrot.lane.b32.xlu1 %v736_v28, %s2057_s8  ;;  %741 = vrot.lane.b32.xlu0 %v733_v29, %s2057_s8  ;;  %v891_v28 = vsel %vm88_vm1, %v889_v17, %v890_v19  ;;  %v894_v29 = vrot.slane %v879_v20, 2  ;;  %v2391_v17 = vmul.f32 %v2373_v59, %v2096_v2 }
  0x7a   :  { %v895_v39 = vsel %vm88_vm1, %v890_v19, %v894_v29  ;;  %v2396_v19 = vstv %s2357_s20  ;;  %v1002_v29 = vmul.f32 %v999_v14, %v2086_v0  ;;  %s2910_s20 = sld [smem:[#allocation2 + $0x105]] }
  0x7c   :  { %747 = vrot.lane.b32.xlu1 %v740_v32, %s2057_s8  ;;  %745 = vrot.lane.b32.xlu0 %v738_v33, %s2057_s8  ;;  %v888_v32 = vsel %vm88_vm1, %v886_v23, %v887_v24  ;;  %v919_v33 = vmul.f32 %v915_v25, %v2096_v2  ;;  %v976_v23 = vrot.slane %v962_v9, 4  ;;  %v1003_v25 = vmul.f32 %v999_v14, %v2096_v2 }
  0x7d   :  { %v1013_v50 = vrot.slane %v1002_v29, 5  ;;  %v2480_v29 = vstv %s2425_s25  ;;  %s3085_s25 = sld [smem:[#allocation2 + $0x305]] }
  0x7e   :  { %v932_v43 = vrot.slane %v919_v33, 3  ;;  %v1016_v46 = vrot.slane %v1003_v25, 5 }
  0x80   :  { %785 = vrot.lane.b32.xlu1 %v778_v40, %s2057_s8  ;;  %783 = vrot.lane.b32.xlu0 %v775_v41, %s2057_s8  ;;  %v893_v40 = vsel %vm88_vm1, %v887_v24, %v892_v30  ;;  %v931_v41 = vrot.slane %v917_v31, 3  ;;  %v1001_v24 = vmul.f32 %v999_v14, %v2101_v3  ;;  %v2409_v30 = vstv %s2367_s21  ;;  %s2947_s21 = sld [smem:[#allocation2 + $0x185]] }
  0x81   :  { %v2413_v31 = vmul.f32 %v2396_v19, %v2096_v2  ;;  %v36_v51 = vmul.f32 %v2409_v30, %v2096_v2 }
  0x82   :  { %v933_v53 = vsel %vm121_vm2, %v931_v41, %v932_v43 }
  0x83   :  { %v3459_v52 = vrot.slane %v2413_v31, 2 }
  0x84   :  { %789 = vrot.lane.b32.xlu1 %v782_v44, %s2057_s8  ;;  %787 = vrot.lane.b32.xlu0 %v780_v45, %s2057_s8  ;;  %v928_v44 = vrot.slane %v916_v34, 3  ;;  %v929_v45 = vrot.slane %v918_v35, 3  ;;  %v3460_v35 = vrot.slane %v2391_v17, 1 }
  0x88   :  { %813 = vrot.lane.b32.xlu1 %v804_v48, %s2058_s16  ;;  %811 = vrot.lane.b32.xlu0 %v803_v49, %s2058_s16  ;;  %v959_v49 = vmul.f32 %v957_v38, %v2101_v3 }
  0x8a   :  { %v2309_v63 = vpop.permute.xlu1 %253  ;;  %v2311_v4 = vpop.permute.xlu0 %249  ;;  %v973_v60 = vrot.slane %v959_v49, 4 }
  0x8c   :  { %817 = vrot.lane.b32.xlu1 %v806_v54, %s2058_s16  ;;  %815 = vrot.lane.b32.xlu0 %v805_v55, %s2058_s16  ;;  %v930_v54 = vsel %vm121_vm2, %v928_v44, %v929_v45  ;;  %v936_v55 = vrot.slane %v921_v42, 3  ;;  %v975_v20 = vsel %vm154_vm3, %v973_v60, %v974_v61  ;;  %v977_v42 = vsel %vm154_vm3, %v971_v5, %v976_v23 }
  0x8d   :  { %v1041_v44 = vstv %s2381_s23  ;;  %s2060_s23 = smov 123  }
  0x8e   :  { %v2321_v15 = vpop.permute.xlu1 %255  ;;  %v2323_v16 = vpop.permute.xlu0 %251  ;;  %v937_v10 = vsel %vm121_vm2, %v932_v43, %v936_v55  ;;  %v1004_v43 = vmul.f32 %v999_v14, %v2113_v8  ;;  %v1043_v9 = vmul.f32 %v1041_v44, %v2101_v3 }
  0x90   :  { %856 = vrot.lane.b32.xlu1 %v849_v11, %s2058_s16  ;;  %854 = vrot.lane.b32.xlu0 %v846_v12, %s2058_s16  ;;  %v935_v11 = vsel %vm121_vm2, %v929_v45, %v934_v56  ;;  %v1015_v45 = vrot.slane %v1001_v24, 5 }
  0x92   :  { %v2331_v26 = vpop.permute.xlu1 %294  ;;  %v2333_v27 = vpop.permute.xlu0 %292 }
  0x93   :  { %3479 = vst [vmem:[#allocation8_spill] sm:$0xff] %v2333_v27 }
  0x94   :  { %860 = vrot.lane.b32.xlu1 %v853_v18, %s2058_s16  ;;  %858 = vrot.lane.b32.xlu0 %v851_v22, %s2058_s16  ;;  %v48_v18 = vmul.f32 %v2373_v59, %v2108_v7  ;;  %v978_v22 = vrot.slane %v963_v6, 4  ;;  %v1018_v6 = vrot.slane %v1004_v43, 5 }
  0x96   :  { %v2343_v36 = vpop.permute.xlu1 %298  ;;  %v2345_v37 = vpop.permute.xlu0 %296  ;;  %v64_v38 = vrot.slane %v48_v18, 1  ;;  %v979_v41 = vsel %vm154_vm3, %v974_v61, %v978_v22  ;;  %v1042_v18 = vmul.f32 %v1041_v44, %v2091_v1 }
  0x97   :  { %3480 = vst [vmem:[#allocation9_spill] sm:$0xff] %v2343_v36  ;;  %3481 = vst [vmem:[#allocation10_spill] sm:$0xff] %v2345_v37 }
  0x98   :  { %898 = vrot.lane.b32.xlu1 %v891_v28, %s2058_s16  ;;  %896 = vrot.lane.b32.xlu0 %v888_v32, %s2058_s16  ;;  %v1000_v28 = vmul.f32 %v999_v14, %v2091_v1  ;;  %v81_v32 = vmul.f32 %v2396_v19, %v2108_v7  ;;  %v65_v60 = vsel %vm55_vm0, %v3460_v35, %v64_v38 }
  0x99   :  { %v147_v1 = vmul.f32 %v2451_v62, %v2108_v7  ;;  %v1019_v38 = vsel %vm187_vm4, %v1013_v50, %v1018_v6  ;;  %v2517_v6 = vstv %s2453_s26  ;;  %s1988_s26 = sld [smem:[#allocation2 + $0x6]] }
  0x9a   :  { %v2353_v47 = vpop.permute.xlu1 %336  ;;  %v2355_v48 = vpop.permute.xlu0 %334  ;;  %v1012_v49 = vrot.slane %v1000_v28, 5  ;;  %v2475_v28 = vmul.f32 %v2451_v62, %v2096_v2 }
  0x9b   :  { %3482 = vst [vmem:[#allocation11_spill] sm:$0xff] %v2353_v47  ;;  %3483 = vst [vmem:[#allocation12_spill] sm:$0xff] %v2355_v48 }
  0x9c   :  { %902 = vrot.lane.b32.xlu1 %v895_v39, %s2058_s16  ;;  %900 = vrot.lane.b32.xlu0 %v893_v40, %s2058_s16  ;;  %v2423_v39 = vstv %s2375_s22  ;;  %v1005_v40 = vmul.f32 %v999_v14, %v2108_v7  ;;  %v1014_v14 = vsel %vm187_vm4, %v1012_v49, %v1013_v50  ;;  %v1046_v49 = vmul.f32 %v1041_v44, %v2113_v8  ;;  %s2973_s22 = sld [smem:[#allocation2 + $0x205]] }
  0x9d   :  { %v114_v61 = vmul.f32 %v2423_v39, %v2108_v7  ;;  %v2501_v50 = vmul.f32 %v2423_v39, %v2113_v8 }
  0x9e   :  { %v2369_v57 = vpop.permute.xlu1 %340  ;;  %v2371_v58 = vpop.permute.xlu0 %338  ;;  %v1020_v5 = vrot.slane %v1005_v40, 5  ;;  %v1057_v40 = vrot.slane %v1043_v9, 6  ;;  %v3461_v9 = vrot.slane %v2475_v28, 4 }
  0x9f   :  { %3484 = vst [vmem:[#allocation13_spill] sm:$0xff] %v2369_v57  ;;  %3485 = vst [vmem:[#allocation14_spill] sm:$0xff] %v2371_v58  ;;  %v130_v25 = vrot.slane %v114_v61, 3 }
  0xa0   :  { %940 = vrot.lane.b32.xlu1 %v933_v53, %s2058_s16  ;;  %938 = vrot.lane.b32.xlu0 %v930_v54, %s2058_s16  ;;  %v97_v53 = vrot.slane %v81_v32, 2  ;;  %v2439_v54 = vmul.f32 %v2423_v39, %v2096_v2  ;;  %v1021_v32 = vsel %vm187_vm4, %v1016_v46, %v1020_v5  ;;  %v2514_v5 = vmul.f32 %v2451_v62, %v2113_v8 }
  0xa2   :  { %v2385_v12 = vpop.permute.xlu1 %378  ;;  %v2387_v13 = vpop.permute.xlu0 %376  ;;  %v98_v22 = vsel %vm88_vm1, %v3459_v52, %v97_v53  ;;  %v3458_v23 = vrot.slane %v2439_v54, 3 }
  0xa3   :  { %3486 = vst [vmem:[#allocation15_spill] sm:$0xff] %v2385_v12  ;;  %3487 = vst [vmem:[#allocation16_spill] sm:$0xff] %v2387_v13 }
  0xa4   :  { %944 = vrot.lane.b32.xlu1 %v937_v10, %s2058_s16  ;;  %942 = vrot.lane.b32.xlu0 %v935_v11, %s2058_s16  ;;  %v2459_v10 = vmul.f32 %v1041_v44, %v2096_v2  ;;  %v1017_v11 = vsel %vm187_vm4, %v1015_v45, %v1016_v46  ;;  %v1047_v45 = vmul.f32 %v1041_v44, %v2108_v7 }
  0xa5   :  { %v2497_v46 = vmul.f32 %v2396_v19, %v2113_v8  ;;  %v131_v61 = vsel %vm121_vm2, %v3458_v23, %v130_v25  ;;  %v180_v23 = vmul.f32 %v2480_v29, %v2108_v7 }
  0xa6   :  { %v2417_v33 = vpop.permute.xlu1 %382  ;;  %v2419_v34 = vpop.permute.xlu0 %380 }
  0xa7   :  { %3488 = vst [vmem:[#allocation17_spill] sm:$0xff] %v2417_v33  ;;  %3489 = vst [vmem:[#allocation18_spill] sm:$0xff] %v2419_v34  ;;  %v3504_v13 = vrot.slane %v2497_v46, 2 }
  0xa8   :  { %982 = vrot.lane.b32.xlu1 %v975_v20, %s2058_s16  ;;  %980 = vrot.lane.b32.xlu0 %v972_v21, %s2058_s16  ;;  %v1044_v20 = vmul.f32 %v1041_v44, %v2086_v0  ;;  %v73_v21 = vadd.f32 %v65_v60, %v36_v51  ;;  %v2493_v51 = vmul.f32 %v2373_v59, %v2113_v8 }
  0xaa   :  { %v2441_v55 = vpop.permute.xlu1 %420  ;;  %v2443_v56 = vpop.permute.xlu0 %418  ;;  %v1055_v43 = vrot.slane %v1044_v20, 6  ;;  %v106_v44 = vadd.f32 %v98_v22, %v73_v21  ;;  %v1062_v21 = vrot.slane %v1047_v45, 6  ;;  %v1060_v22 = vrot.slane %v1046_v49, 6 }
  0xab   :  { %3490 = vst [vmem:[#allocation19_spill] sm:$0xff] %v2441_v55  ;;  %3491 = vst [vmem:[#allocation20_spill] sm:$0xff] %v2443_v56  ;;  %v62_v25 = vrot.slane %v2493_v51, 1  ;;  %v196_v45 = vrot.slane %v180_v23, 5  ;;  %v2606_v23 = vld [vmem:[%s3456_s1] sm:$0xff]  ;;  %v1154_v55 = vstv %s2560_s29 }
  0xac   :  { %986 = vrot.lane.b32.xlu1 %v979_v41, %s2058_s16  ;;  %984 = vrot.lane.b32.xlu0 %v977_v42, %s2058_s16  ;;  %v1058_v41 = vrot.slane %v2459_v10, 6  ;;  %v1054_v42 = vrot.slane %v1042_v18, 6  ;;  %v163_v10 = vrot.slane %v147_v1, 4  ;;  %v43_v46 = vmul.f32 %v2606_v23, %v2373_v59 }
  0xad   :  { %v1155_v48 = vmul.f32 %v2606_v23, %v1154_v55 }
  0xae   :  { %v2469_v24 = vpop.permute.xlu1 %424  ;;  %v2471_v3 = vpop.permute.xlu0 %422  ;;  %v1059_v18 = vsel %vm220_vm5, %v1057_v40, %v1058_v41  ;;  %v1056_v20 = vsel %vm220_vm5, %v1054_v42, %v1055_v43  ;;  %v2543_v40 = vmul.f32 %v2517_v6, %v2096_v2  ;;  %v2547_v42 = vmul.f32 %v2373_v59, %v2086_v0 }
  0xaf   :  { %3492 = vst [vmem:[#allocation21_spill] sm:$0xff] %v2469_v24  ;;  %3493 = vst [vmem:[#allocation22_spill] sm:$0xff] %v2471_v3  ;;  %v164_v49 = vsel %vm154_vm3, %v3461_v9, %v163_v10  ;;  %v1083_v10 = vstv %s2489_s27  ;;  %v2568_v9 = vmul.f32 %v2517_v6, %v2108_v7  ;;  %s1989_s27 = sld [smem:[#allocation2 + $0x86]] }
  0xb0   :  { %1024 = vrot.lane.b32.xlu1 %v1017_v11, %s2058_s16  ;;  %1022 = vrot.lane.b32.xlu0 %v1014_v14, %s2058_s16  ;;  %v2522_v11 = vmul.f32 %v2480_v29, %v2096_v2  ;;  %v2526_v14 = vmul.f32 %v2480_v29, %v2113_v8  ;;  %v1063_v2 = vsel %vm220_vm5, %v1058_v41, %v1062_v21  ;;  %v3503_v24 = vrot.slane %v2547_v42, 1 }
  0xb1   :  { %v1084_v0 = vmul.f32 %v2606_v23, %v1083_v10 }
  0xb2   :  { %v2503_v53 = vpop.permute.xlu1 %462  ;;  %v2505_v60 = vpop.permute.xlu0 %460 }
  0xb3   :  { %3494 = vst [vmem:[#allocation23_spill] sm:$0xff] %v2503_v53  ;;  %3495 = vst [vmem:[#allocation24_spill] sm:$0xff] %v2505_v60 }
  0xb4   :  { %1028 = vrot.lane.b32.xlu1 %v1021_v32, %s2058_s16  ;;  %1026 = vrot.lane.b32.xlu0 %v1019_v38, %s2058_s16  ;;  %v139_v38 = vadd.f32 %v131_v61, %v106_v44  ;;  %v2556_v44 = vmul.f32 %v2517_v6, %v2113_v8  ;;  %v1061_v61 = vsel %vm220_vm5, %v1055_v43, %v1060_v22  ;;  %v2573_v8 = vld [vmem:[%s3456_s1 + $0x10] sm:$0xff]  ;;  %v1112_v43 = vstv %s2507_s28  ;;  %s3259_s28 = sld [smem:[#allocation2 + $0x106]] }
  0xb5   :  { %v2590_v22 = vmul.f32 %v2573_v8, %v2423_v39  ;;  %v35_v32 = vmul.f32 %v2573_v8, %v2409_v30  ;;  %v1113_v7 = vmul.f32 %v2606_v23, %v1112_v43  ;;  %v1115_v51 = vmul.f32 %v2573_v8, %v1112_v43 }
  0xb6   :  { %v2536_v52 = vpop.permute.xlu1 %466  ;;  %v2538_v35 = vpop.permute.xlu0 %464  ;;  %v2584_v21 = vadd.f32 %v164_v49, %v139_v38  ;;  %v2600_v38 = vld [vmem:[%s3456_s1 + $0x8] sm:$0xff]  ;;  %v2630_v60 = vmul.f32 %v2573_v8, %v2480_v29 }
  0xb7   :  { %3496 = vst [vmem:[#allocation25_spill] sm:$0xff] %v2536_v52  ;;  %3497 = vst [vmem:[#allocation26_spill] sm:$0xff] %v2538_v35  ;;  %v1085_v49 = vmul.f32 %v2600_v38, %v1083_v10  ;;  %v1114_v1 = vmul.f32 %v2600_v38, %v1112_v43  ;;  %v2626_v52 = vmul.f32 %v2573_v8, %v2451_v62  ;;  %v1126_v33 = vrot.slane %v1115_v51, 1 }
  0xb8   :  { %1066 = vrot.lane.b32.xlu1 %v1059_v18, %s2058_s16  ;;  %1064 = vrot.lane.b32.xlu0 %v1056_v20, %s2058_s16  ;;  %v2577_v18 = vmul.f32 %v2573_v8, %v2396_v19  ;;  %v2642_v35 = vmul.f32 %v2573_v8, %v2517_v6  ;;  %v44_v51 = vmul.f32 %v2600_v38, %v2373_v59 }
  0xb9   :  { %v1157_v59 = vmul.f32 %v2573_v8, %v1154_v55 }
  0xba   :  { %v2579_v20 = vpop.permute.xlu1 %504  ;;  %v2581_v41 = vpop.permute.xlu0 %502  ;;  %v3505_v12 = vrot.slane %v2577_v18, 2 }
  0xbb   :  { %3498 = vst [vmem:[#allocation27_spill] sm:$0xff] %v2579_v20  ;;  %3499 = vst [vmem:[#allocation28_spill] sm:$0xff] %v2581_v41  ;;  %v3500_v41 = vrot.slane %v2522_v11, 5  ;;  %v1168_v27 = vrot.slane %v1157_v59, 2  ;;  %v109_v59 = vmul.f32 %v2606_v23, %v2423_v39 }
  0xbc   :  { %1070 = vrot.lane.b32.xlu1 %v1063_v2, %s2058_s16  ;;  %1068 = vrot.lane.b32.xlu0 %v1061_v61, %s2058_s16  ;;  %v2613_v2 = vld [vmem:[%s3456_s1 + $0x18] sm:$0xff]  ;;  %v96_v58 = vsel %vm88_vm1, %v3505_v12, %v3504_v13  ;;  %v34_v12 = vmul.f32 %v2600_v38, %v2409_v30  ;;  %s2715_s16 = sld [smem:[#allocation2 + $0x204]] }
  0xbd   :  { %v1116_v61 = vmul.f32 %v2613_v2, %v1112_v43  ;;  %v2621_v20 = vsel %vm187_vm4, %v3500_v41, %v196_v45  ;;  %v63_v45 = vsel %vm55_vm0, %v3503_v24, %v62_v25  ;;  %v1087_v56 = vmul.f32 %v2613_v2, %v1083_v10  ;;  %v2657_v25 = vld [vmem:[%s3456_s1 + $0x20] sm:$0x3f] }
  0xbe   :  { %v2632_v53 = vpop.permute.xlu1 %508  ;;  %v2634_v3 = vpop.permute.xlu0 %506  ;;  %v1117_v41 = vmul.f32 %v2657_v25, %v1112_v43 }
  0xbf   :  { %3501 = vst [vmem:[#allocation29_spill] sm:$0xff] %v2632_v53  ;;  %3502 = vst [vmem:[#allocation30_spill] sm:$0xff] %v2634_v3  ;;  %v1086_v53 = vmul.f32 %v2573_v8, %v1083_v10  ;;  %v2651_v3 = vld [vmem:[%s3456_s1 + $0x28] sm:$0x3f]  ;;  %v1129_v34 = vrot.slane %v1116_v61, 1  ;;  %v72_v10 = vadd.f32 %v63_v45, %v35_v32  ;;  %v1156_v32 = vmul.f32 %v2600_v38, %v1154_v55 }
  0xc0   :  { %1094 = vrot.lane.b32.xlu1 %v1085_v49, %s2059_s10  ;;  %1092 = vrot.lane.b32.xlu0 %v1084_v0, %s2059_s10  ;;  %v1118_v24 = vmul.f32 %v2651_v3, %v1112_v43  ;;  %v1128_v49 = vrot.slane %v1114_v1, 1  ;;  %v1125_v0 = vrot.slane %v1113_v7, 1  ;;  %v1131_v7 = vrot.slane %v1117_v41, 1 }
  0xc1   :  { %v1158_v61 = vmul.f32 %v2613_v2, %v1154_v55  ;;  %v2689_v57 = vadd.f32 %v96_v58, %v72_v10  ;;  %v77_v41 = vmul.f32 %v2600_v38, %v2396_v19  ;;  %v59_v58 = vrot.slane %v44_v51, 1 }
  0xc2   :  { %v2670_v47 = vpop.permute.xlu1 %532  ;;  %v2672_v43 = vpop.permute.xlu0 %530  ;;  %v1133_v13 = vrot.slane %v1118_v24, 1  ;;  %v1130_v45 = vsel %vm55_vm0, %v1128_v49, %v1129_v34  ;;  %v1127_v1 = vsel %vm55_vm0, %v1125_v0, %v1126_v33  ;;  %v110_v24 = vmul.f32 %v2600_v38, %v2423_v39 }
  0xc3   :  { %3506 = vst [vmem:[#allocation31_spill] sm:$0xff] %v2670_v47  ;;  %3507 = vst [vmem:[#allocation32_spill] sm:$0xff] %v2672_v43  ;;  %v3508_v43 = vrot.slane %v2501_v50, 3  ;;  %v56_v10 = vrot.slane %v43_v46, 1  ;;  %v76_v50 = vmul.f32 %v2606_v23, %v2396_v19  ;;  %v1170_v47 = vrot.slane %v1156_v32, 2 }
  0xc4   :  { %1098 = vrot.lane.b32.xlu1 %v1087_v56, %s2059_s10  ;;  %1096 = vrot.lane.b32.xlu0 %v1086_v53, %s2059_s10  ;;  %v3509_v56 = vrot.slane %v2590_v22, 3  ;;  %v1171_v37 = vrot.slane %v1158_v61, 2  ;;  %v1160_v36 = vmul.f32 %v2651_v3, %v1154_v55  ;;  %v1159_v51 = vmul.f32 %v2657_v25, %v1154_v55 }
  0xc5   :  { %v1196_v46 = vstv %s2661_s15  ;;  %v92_v19 = vrot.slane %v77_v41, 2  ;;  %v2719_v32 = vmul.f32 %v2600_v38, %v2451_v62  ;;  %v3514_v55 = vrot.slane %v2391_v17, 1  ;;  %s1993_s15 = sld [smem:[#allocation2 + $0x286]] }
  0xc6   :  { %v2696_v53 = vsel %vm121_vm2, %v3509_v56, %v3508_v43  ;;  %v2702_v49 = vpop.permute.xlu1 %536  ;;  %v2704_v0 = vpop.permute.xlu0 %534  ;;  %v1134_v43 = vsel %vm55_vm0, %v1129_v34, %v1133_v13  ;;  %v1132_v56 = vsel %vm55_vm0, %v1126_v33, %v1131_v7  ;;  %v2723_v34 = vmul.f32 %v2600_v38, %v2480_v29 }
  0xc7   :  { %3510 = vst [vmem:[#allocation33_spill] sm:$0xff] %v2702_v49  ;;  %3511 = vst [vmem:[#allocation34_spill] sm:$0xff] %v2704_v0  ;;  %v1167_v49 = vrot.slane %v1155_v48, 2  ;;  %v33_v33 = vmul.f32 %v2606_v23, %v2409_v30  ;;  %v61_v13 = vsel %vm55_vm0, %v59_v58, %v3514_v55  ;;  %v3515_v7 = vrot.slane %v2547_v42, 1 }
  0xc8   :  { %1137 = vrot.lane.b32.xlu1 %v1130_v45, %s2059_s10  ;;  %1135 = vrot.lane.b32.xlu0 %v1127_v1, %s2059_s10  ;;  %v89_v45 = vrot.slane %v76_v50, 2  ;;  %v1172_v30 = vsel %vm88_vm1, %v1170_v47, %v1171_v37  ;;  %v1175_v41 = vrot.slane %v1160_v36, 2  ;;  %v1200_v17 = vmul.f32 %v2613_v2, %v1196_v46 }
  0xc9   :  { %v58_v61 = vsel %vm55_vm0, %v56_v10, %v3515_v7  ;;  %v1169_v58 = vsel %vm88_vm1, %v1167_v49, %v1168_v27  ;;  %v1173_v42 = vrot.slane %v1159_v51, 2  ;;  %v1197_v10 = vmul.f32 %v2606_v23, %v1196_v46 }
  0xca   :  { %v2727_v1 = vpop.permute.xlu1 %575  ;;  %v2729_v48 = vpop.permute.xlu0 %573  ;;  %v1199_v50 = vmul.f32 %v2573_v8, %v1196_v46  ;;  %v71_v55 = vadd.f32 %v61_v13, %v34_v12  ;;  %v3516_v39 = vrot.slane %v2413_v31, 2  ;;  %v142_v36 = vmul.f32 %v2606_v23, %v2451_v62 }
  0xcb   :  { %3512 = vst [vmem:[#allocation35_spill] sm:$0xff] %v2727_v1  ;;  %3513 = vst [vmem:[#allocation36_spill] sm:$0xff] %v2729_v48  ;;  %v1198_v48 = vmul.f32 %v2600_v38, %v1196_v46  ;;  %v70_v49 = vadd.f32 %v58_v61, %v33_v33  ;;  %v3517_v51 = vrot.slane %v2577_v18, 2  ;;  %v122_v0 = vrot.slane %v109_v59, 3 }
  0xcc   :  { %1141 = vrot.lane.b32.xlu1 %v1134_v43, %s2059_s10  ;;  %1139 = vrot.lane.b32.xlu0 %v1132_v56, %s2059_s10  ;;  %v94_v43 = vsel %vm88_vm1, %v92_v19, %v3516_v39  ;;  %v125_v56 = vrot.slane %v110_v24, 3  ;;  %v1202_v12 = vmul.f32 %v2651_v3, %v1196_v46  ;;  %v1176_v31 = vsel %vm88_vm1, %v1171_v37, %v1175_v41 }
  0xcd   :  { %v91_v1 = vsel %vm88_vm1, %v89_v45, %v3517_v51  ;;  %v1212_v62 = vrot.slane %v1198_v48, 3  ;;  %v1213_v24 = vrot.slane %v1200_v17, 3  ;;  %v1201_v19 = vmul.f32 %v2657_v25, %v1196_v46 }
  0xce   :  { %v2752_v47 = vpop.permute.xlu1 %579  ;;  %v2754_v7 = vpop.permute.xlu0 %577  ;;  %v1174_v13 = vsel %vm88_vm1, %v1168_v27, %v1173_v42  ;;  %v1209_v33 = vrot.slane %v1197_v10, 3  ;;  %v1210_v61 = vrot.slane %v1199_v50, 3  ;;  %v1238_v18 = vstv %s2715_s16  ;;  %s3364_s16 = sld [smem:[#allocation2 + $0x306]] }
  0xcf   :  { %v104_v45 = vadd.f32 %v94_v43, %v71_v55  ;;  %v3518_v59 = vrot.slane %v2439_v54, 3  ;;  %v2774_v37 = vmul.f32 %v2600_v38, %v2517_v6  ;;  %v103_v27 = vadd.f32 %v91_v1, %v70_v49 }
  0xd0   :  { %1179 = vrot.lane.b32.xlu1 %v1172_v30, %s2059_s10  ;;  %1177 = vrot.lane.b32.xlu0 %v1169_v58, %s2059_s10  ;;  %v158_v58 = vrot.slane %v2719_v32, 4  ;;  %v155_v41 = vrot.slane %v142_v36, 4  ;;  %v175_v17 = vmul.f32 %v2606_v23, %v2480_v29  ;;  %v1217_v42 = vrot.slane %v1202_v12, 3 }
  0xd1   :  { %v127_v30 = vsel %vm121_vm2, %v125_v56, %v3518_v59  ;;  %v3519_v54 = vrot.slane %v2590_v22, 3  ;;  %v1215_v32 = vrot.slane %v1201_v19, 3  ;;  %v1240_v50 = vmul.f32 %v2600_v38, %v1238_v18 }
  0xd2   :  { %v2776_v48 = vpop.permute.xlu1 %617  ;;  %v2778_v46 = vpop.permute.xlu0 %615  ;;  %v1242_v55 = vmul.f32 %v2613_v2, %v1238_v18  ;;  %v1214_v1 = vsel %vm121_vm2, %v1212_v62, %v1213_v24  ;;  %v1211_v39 = vsel %vm121_vm2, %v1209_v33, %v1210_v61  ;;  %v1239_v29 = vmul.f32 %v2606_v23, %v1238_v18 }
  0xd3   :  { %v124_v10 = vsel %vm121_vm2, %v122_v0, %v3519_v54  ;;  %v1241_v43 = vmul.f32 %v2573_v8, %v1238_v18  ;;  %v137_v22 = vadd.f32 %v127_v30, %v104_v45  ;;  %v3520_v0 = vrot.slane %v2475_v28, 4 }
  0xd4   :  { %1183 = vrot.lane.b32.xlu1 %v1176_v31, %s2059_s10  ;;  %1181 = vrot.lane.b32.xlu0 %v1174_v13, %s2059_s10  ;;  %v191_v36 = vrot.slane %v2723_v34, 5  ;;  %v208_v49 = vmul.f32 %v2606_v23, %v2517_v6  ;;  %v136_v31 = vadd.f32 %v124_v10, %v103_v27  ;;  %v3521_v62 = vrot.slane %v2626_v52, 4 }
  0xd5   :  { %v160_v56 = vsel %vm154_vm3, %v158_v58, %v3520_v0  ;;  %v188_v13 = vrot.slane %v175_v17, 5  ;;  %v1218_v28 = vsel %vm121_vm2, %v1213_v24, %v1217_v42  ;;  %v1216_v6 = vsel %vm121_vm2, %v1210_v61, %v1215_v32 }
  0xd6   :  { %v2799_v51 = vpop.permute.xlu1 %621  ;;  %v2801_v12 = vpop.permute.xlu0 %619  ;;  %v157_v19 = vsel %vm154_vm3, %v155_v41, %v3521_v62  ;;  %v1254_v34 = vrot.slane %v1240_v50, 4  ;;  %v1255_v33 = vrot.slane %v1242_v55, 4  ;;  %v1244_v45 = vmul.f32 %v2651_v3, %v1238_v18 }
  0xd7   :  { %v1251_v59 = vrot.slane %v1239_v29, 4  ;;  %v1252_v30 = vrot.slane %v1241_v43, 4  ;;  %v1243_v58 = vmul.f32 %v2657_v25, %v1238_v18  ;;  %v1280_v27 = vstv %s2766_s17  ;;  %s2062_s17 = smov [#allocation5]  }
  0xd8   :  { %1221 = vrot.lane.b32.xlu1 %v1214_v1, %s2059_s10  ;;  %1219 = vrot.lane.b32.xlu0 %v1211_v39, %s2059_s10  ;;  %v138_v24 = vadd.f32 %v2696_v53, %v2689_v57  ;;  %v3522_v41 = vrot.slane %v2514_v5, 4  ;;  %v3523_v17 = vmov %v3521_v62  ;;  %v3524_v61 = vrot.slane %v2522_v11, 5 }
  0xd9   :  { %v224_v10 = vrot.slane %v2774_v37, 6  ;;  %v170_v18 = vadd.f32 %v160_v56, %v137_v22  ;;  %v169_v55 = vadd.f32 %v157_v19, %v136_v31  ;;  %v3525_v57 = vrot.slane %v2630_v60, 5 }
  0xda   :  { %v162_v42 = vsel %vm154_vm3, %v3523_v17, %v3522_v41  ;;  %v193_v54 = vsel %vm187_vm4, %v191_v36, %v3524_v61  ;;  %v2826_v32 = vpop.permute.xlu1 %659  ;;  %v2828_v50 = vpop.permute.xlu0 %657  ;;  %v221_v53 = vrot.slane %v208_v49, 6  ;;  %v1256_v52 = vsel %vm154_vm3, %v1254_v34, %v1255_v33 }
  0xdb   :  { %v190_v5 = vsel %vm187_vm4, %v188_v13, %v3525_v57  ;;  %v1259_v11 = vrot.slane %v1244_v45, 4  ;;  %v1282_v37 = vmul.f32 %v2600_v38, %v1280_v27  ;;  %v1284_v1 = vmul.f32 %v2613_v2, %v1280_v27 }
  0xdc   :  { %1225 = vrot.lane.b32.xlu1 %v1218_v28, %s2059_s10  ;;  %1223 = vrot.lane.b32.xlu0 %v1216_v6, %s2059_s10  ;;  %v1253_v39 = vsel %vm154_vm3, %v1251_v59, %v1252_v30  ;;  %v1257_v29 = vrot.slane %v1243_v58, 4  ;;  %v1281_v43 = vmul.f32 %v2606_v23, %v1280_v27  ;;  %v1283_v22 = vmul.f32 %v2573_v8, %v1280_v27 }
  0xdd   :  { %v229_v0 = vrot.slane %v2568_v9, 6  ;;  %v171_v56 = vadd.f32 %v162_v42, %v138_v24  ;;  %v3526_v36 = vrot.slane %v2526_v14, 5  ;;  %v3527_v49 = vmov %v3525_v57 }
  0xde   :  { %v3528_v62 = vrot.slane %v2543_v40, 6  ;;  %v2850_v13 = vpop.permute.xlu1 %663  ;;  %v2852_v28 = vpop.permute.xlu0 %661  ;;  %v203_v6 = vadd.f32 %v193_v54, %v170_v18  ;;  %v202_v34 = vadd.f32 %v190_v5, %v169_v55  ;;  %v3529_v45 = vrot.slane %v2642_v35, 6 }
  0xdf   :  { %v195_v31 = vsel %vm187_vm4, %v3527_v49, %v3526_v36  ;;  %v1322_v59 = vstv %s2807_s18  ;;  %v1260_v60 = vsel %vm154_vm3, %v1255_v33, %v1259_v11  ;;  %v1296_v14 = vrot.slane %v1282_v37, 5  ;;  %v3533_v49 = vld [vmem:[#allocation8_spill] sm:$0xff]  ;;  %s1935_s18 = sshll.u32 %s2062_s17, 4  ;;  %s1936_s18 = int_to_ptr.vmem [resolvable:$true] %s1935_s18 }
  0xe0   :  { %v226_v19 = vsel %vm220_vm5, %v224_v10, %v3528_v62  ;;  %v223_v9 = vsel %vm220_vm5, %v221_v53, %v3529_v45  ;;  %1263 = vrot.lane.b32.xlu1 %v1256_v52, %s2059_s10  ;;  %1261 = vrot.lane.b32.xlu0 %v1253_v39, %s2059_s10  ;;  %v1297_v58 = vrot.slane %v1284_v1, 5  ;;  %v1286_v24 = vmul.f32 %v2651_v3, %v1280_v27  ;;  %p2034_p6 = scmp.lt.s32.totalorder %s1936_s18, %s1936_s18 }
  0xe1   :  { %v1258_v41 = vsel %vm154_vm3, %v1252_v30, %v1257_v29  ;;  %v1293_v17 = vrot.slane %v1281_v43, 5  ;;  %v1294_v42 = vrot.slane %v1283_v22, 5  ;;  %v1285_v61 = vmul.f32 %v2657_v25, %v1280_v27 }
  0xe2   :  { %v205_v54 = vadd.f32 %v2621_v20, %v2584_v21  ;;  %v3530_v10 = vmov %v3528_v62  ;;  %v204_v55 = vadd.f32 %v195_v31, %v171_v56  ;;  %v2869_v57 = vpop.permute.xlu1 %701  ;;  %v2871_v33 = vpop.permute.xlu0 %699  ;;  %v3531_v5 = vrot.slane %v2556_v44, 6 }
  0xe3   :  { %v230_v18 = vsel %vm220_vm5, %v3530_v10, %v229_v0  ;;  %v3532_v30 = vmov %v3529_v45  ;;  %v236_v52 = vadd.f32 %v226_v19, %v203_v6  ;;  %v235_v27 = vadd.f32 %v223_v9, %v202_v34 }
  0xe4   :  { %v228_v53 = vsel %vm220_vm5, %v3532_v30, %v3531_v5  ;;  %v258_v20 = vsel %vm257_vm6, %v2311_v4, %v2323_v16  ;;  %1267 = vrot.lane.b32.xlu1 %v1260_v60, %s2059_s10  ;;  %1265 = vrot.lane.b32.xlu0 %v1258_v41, %s2059_s10  ;;  %v1298_v40 = vsel %vm187_vm4, %v1296_v14, %v1297_v58  ;;  %v1301_v21 = vrot.slane %v1286_v24, 5  ;;  %v3534_v14 = vld [vmem:[#allocation9_spill] sm:$0xff]  ;;  %v3535_v24 = vld [vmem:[#allocation10_spill] sm:$0xff] }
  0xe5   :  { %v1324_v11 = vmul.f32 %v2600_v38, %v1322_v59  ;;  %v1326_v44 = vmul.f32 %v2613_v2, %v1322_v59  ;;  %v1295_v35 = vsel %vm187_vm4, %v1293_v17, %v1294_v42  ;;  %v1299_v37 = vrot.slane %v1285_v61, 5  ;;  %v3539_v5 = vld [vmem:[#allocation14_spill] sm:$0xff] }
  0xe6   :  { %v1323_v1 = vmul.f32 %v2606_v23, %v1322_v59  ;;  %v1325_v39 = vmul.f32 %v2573_v8, %v1322_v59  ;;  %v238_v29 = vadd.f32 %v230_v18, %v205_v54  ;;  %v237_v4 = vadd.f32 %v228_v53, %v204_v55  ;;  %v2889_v43 = vpop.permute.xlu1 %705  ;;  %v2891_v22 = vpop.permute.xlu0 %703  ;;  %v3537_v18 = vld [vmem:[#allocation12_spill] sm:$0xff] }
  0xe7   :  { %v259_v0 = vsel %vm257_vm6, %v2309_v63, %v2321_v15  ;;  %v264_v56 = vadd.f32 %v258_v20, %v235_v27  ;;  %v265_v36 = vadd.f32 %v2323_v16, %v236_v52  ;;  %v300_v31 = vsel %vm257_vm6, %v3533_v49, %v2331_v26 }
  0xe8   :  { %1305 = vrot.lane.b32.xlu1 %v1298_v40, %s2059_s10  ;;  %1303 = vrot.lane.b32.xlu0 %v1295_v35, %s2059_s10  ;;  %v1302_v62 = vsel %vm187_vm4, %v1297_v58, %v1301_v21  ;;  %v1338_v19 = vrot.slane %v1324_v11, 6  ;;  %v1339_v6 = vrot.slane %v1326_v44, 6  ;;  %v1328_v34 = vmul.f32 %v2651_v3, %v1322_v59 }
  0xe9   :  { %v1300_v63 = vsel %vm187_vm4, %v1294_v42, %v1299_v37  ;;  %v1335_v45 = vrot.slane %v1323_v1, 6  ;;  %v1336_v16 = vrot.slane %v1325_v39, 6  ;;  %v1327_v9 = vmul.f32 %v2657_v25, %v1322_v59  ;;  %v3536_v59 = vld [vmem:[#allocation11_spill] sm:$0xff] }
  0xea   :  { %v267_v60 = vadd.f32 %v2321_v15, %v238_v29  ;;  %v301_v58 = vsel %vm257_vm6, %v3535_v24, %v3534_v14  ;;  %v2916_v41 = vpop.permute.xlu1 %743  ;;  %v2918_v17 = vpop.permute.xlu0 %741  ;;  %v266_v61 = vadd.f32 %v259_v0, %v237_v4  ;;  %v307_v42 = vadd.f32 %v2331_v26, %v265_v36  ;;  %v3538_v15 = vld [vmem:[#allocation13_spill] sm:$0xff]  ;;  %v3540_v39 = vld [vmem:[#allocation15_spill] sm:$0xff]  ;;  %v3541_v4 = vld [vmem:[#allocation16_spill] sm:$0xff] }
  0xeb   :  { %v306_v54 = vadd.f32 %v300_v31, %v264_v56  ;;  %v342_v55 = vsel %vm257_vm6, %v3537_v18, %v3536_v59  ;;  %v343_v30 = vsel %vm257_vm6, %v3539_v5, %v3538_v15  ;;  %v1343_v53 = vrot.slane %v1328_v34, 6  ;;  %v3542_v34 = vld [vmem:[#allocation17_spill] sm:$0xff] }
  0xec   :  { %v309_v10 = vadd.f32 %v3534_v14, %v267_v60  ;;  %1309 = vrot.lane.b32.xlu1 %v1302_v62, %s2059_s10  ;;  %1307 = vrot.lane.b32.xlu0 %v1300_v63, %s2059_s10  ;;  %v308_v52 = vadd.f32 %v301_v58, %v266_v61  ;;  %v1340_v26 = vsel %vm220_vm5, %v1338_v19, %v1339_v6  ;;  %v1341_v20 = vrot.slane %v1327_v9, 6  ;;  %v3543_v63 = vld [vmem:[#allocation18_spill] sm:$0xff] }
  0xed   :  { %v1337_v27 = vsel %vm220_vm5, %v1335_v45, %v1336_v16  ;;  %v349_v40 = vadd.f32 %v3536_v59, %v307_v42  ;;  %v1393_v44 = vstv %s2893_s0  ;;  %v348_v35 = vadd.f32 %v342_v55, %v306_v54  ;;  %s2029_s0 = scalar_lea.vmem %s1936_s18, 512 }
  0xee   :  { %v2933_v21 = vpop.permute.xlu1 %747  ;;  %v2935_v11 = vpop.permute.xlu0 %745  ;;  %v351_v37 = vadd.f32 %v3538_v15, %v309_v10  ;;  %v350_v1 = vadd.f32 %v343_v30, %v308_v52  ;;  %v384_v0 = vsel %vm257_vm6, %v3541_v4, %v3540_v39  ;;  %v1344_v56 = vsel %vm220_vm5, %v1339_v6, %v1343_v53  ;;  %v3546_v30 = vld [vmem:[#allocation19_spill] sm:$0xff]  ;;  %v3547_v53 = vld [vmem:[#allocation20_spill] sm:$0xff]  ;;  %p2030_p5 = scmp.ne.s32.totalorder %s1936_s18, %s2029_s0  ;;  %p2035_p7 = scmp.lt.s32.totalorder %s2029_s0, %s2029_s0 }
  0xef   :  { %v391_v29 = vadd.f32 %v3540_v39, %v349_v40  ;;  %v1364_v36 = vstv %s2906_s19  ;;  %v1342_v49 = vsel %vm220_vm5, %v1336_v16, %v1341_v20  ;;  %v1395_v31 = vmul.f32 %v2600_v38, %v1393_v44 }
  0xf0   :  { %1347 = vrot.lane.b32.xlu1 %v1340_v26, %s2059_s10  ;;  %1345 = vrot.lane.b32.xlu0 %v1337_v27, %s2059_s10  ;;  %v1397_v62 = vmul.f32 %v2613_v2, %v1393_v44  ;;  %v1435_v19 = vstv %s2910_s20  ;;  %v385_v45 = vsel %vm257_vm6, %v3543_v63, %v3542_v34  ;;  %v1394_v6 = vmul.f32 %v2606_v23, %v1393_v44  ;;  %p2036_p8 = por %p2035_p7, %p2034_p6 }
  0xf1   :  { %v1396_v14 = vmul.f32 %v2573_v8, %v1393_v44  ;;  %v1399_v24 = vmul.f32 %v2651_v3, %v1393_v44  ;;  %v390_v16 = vadd.f32 %v384_v0, %v348_v35  ;;  %v393_v58 = vadd.f32 %v3542_v34, %v351_v37  ;;  %v3549_v35 = vld [vmem:[#allocation21_spill] sm:$0xff]  ;;  %v3550_v37 = vld [vmem:[#allocation22_spill] sm:$0xff] }
  0xf2   :  { %v2956_v9 = vpop.permute.xlu1 %785  ;;  %v2958_v60 = vpop.permute.xlu0 %783  ;;  %v1366_v61 = vmul.f32 %v2600_v38, %v1364_v36  ;;  %v1365_v42 = vmul.f32 %v2606_v23, %v1364_v36  ;;  %v1398_v54 = vmul.f32 %v2657_v25, %v1393_v44  ;;  %v1437_v10 = vmul.f32 %v2600_v38, %v1435_v19  ;;  %p2037_p9 = pnand %p2036_p8, %p2030_p5 }
  0xf3   :  { %3544 = vst [vmem:[#allocation8_spill] sm:$0xff] %v2956_v9  ;;  %3545 = vst [vmem:[#allocation9_spill] sm:$0xff] %v2958_v60  ;;  %v2971_v59 = vmul.f32 %v2613_v2, %v1435_v19  ;;  %v392_v18 = vadd.f32 %v385_v45, %v350_v1  ;;  %v1368_v55 = vmul.f32 %v2613_v2, %v1364_v36  ;;  %v1409_v15 = vrot.slane %v1395_v31, 1 }
  0xf4   :  { %1351 = vrot.lane.b32.xlu1 %v1344_v56, %s2059_s10  ;;  %1349 = vrot.lane.b32.xlu0 %v1342_v49, %s2059_s10  ;;  %v1410_v5 = vrot.slane %v1397_v62, 1  ;;  %v426_v52 = vsel %vm257_vm6, %v3547_v53, %v3546_v30  ;;  %v1406_v20 = vrot.slane %v1394_v6, 1  ;;  %v1407_v40 = vrot.slane %v1396_v14, 1  ;;  %v3553_v53 = vld [vmem:[#allocation23_spill] sm:$0xff] }
  0xf5   :  { %v1414_v44 = vrot.slane %v1399_v24, 1  ;;  %v427_v1 = vsel %vm257_vm6, %v3550_v37, %v3549_v35  ;;  %v1367_v39 = vmul.f32 %v2573_v8, %v1364_v36  ;;  %v1436_v4 = vmul.f32 %v2606_v23, %v1435_v19 }
  0xf6   :  { %v2979_v26 = vpop.permute.xlu1 %789  ;;  %v2981_v27 = vpop.permute.xlu0 %787  ;;  %v1438_v0 = vmul.f32 %v2573_v8, %v1435_v19  ;;  %v1412_v56 = vrot.slane %v1398_v54, 1  ;;  %v1451_v49 = vrot.slane %v1437_v10, 2  ;;  %v1452_v31 = vrot.slane %v2971_v59, 2 }
  0xf7   :  { %3548 = vst [vmem:[#allocation10_spill] sm:$0xff] %v2981_v27  ;;  %v1477_v62 = vstv %s2947_s21  ;;  %v433_v34 = vadd.f32 %v3546_v30, %v391_v29  ;;  %v432_v63 = vadd.f32 %v426_v52, %v390_v16  ;;  %v435_v45 = vadd.f32 %v3549_v35, %v393_v58 }
  0xf8   :  { %1375 = vrot.lane.b32.xlu1 %v1366_v61, %s2060_s23  ;;  %1373 = vrot.lane.b32.xlu0 %v1365_v42, %s2060_s23  ;;  %v1411_v36 = vsel %vm55_vm0, %v1409_v15, %v1410_v5  ;;  %v1408_v24 = vsel %vm55_vm0, %v1406_v20, %v1407_v40  ;;  %v1415_v61 = vsel %vm55_vm0, %v1410_v5, %v1414_v44  ;;  %v1448_v29 = vrot.slane %v1436_v4, 2 }
  0xf9   :  { %v1441_v42 = vmul.f32 %v2651_v3, %v1435_v19  ;;  %v1440_v54 = vmul.f32 %v2657_v25, %v1435_v19  ;;  %v434_v10 = vadd.f32 %v427_v1, %v392_v18  ;;  %v1449_v16 = vrot.slane %v1438_v0, 2 }
  0xfa   :  { %v2996_v6 = vpop.permute.xlu1 %813  ;;  %v2998_v14 = vpop.permute.xlu0 %811  ;;  %v1479_v58 = vmul.f32 %v2600_v38, %v1477_v62  ;;  %v1413_v59 = vsel %vm55_vm0, %v1407_v40, %v1412_v56  ;;  %v1453_v15 = vsel %vm88_vm1, %v1451_v49, %v1452_v31  ;;  %v1481_v30 = vmul.f32 %v2613_v2, %v1477_v62 }
  0xfb   :  { %3551 = vst [vmem:[#allocation11_spill] sm:$0xff] %v2996_v6  ;;  %3552 = vst [vmem:[#allocation12_spill] sm:$0xff] %v2998_v14  ;;  %v1519_v5 = vstv %s2973_s22  ;;  %v475_v52 = vadd.f32 %v3553_v53, %v433_v34  ;;  %v1478_v19 = vmul.f32 %v2606_v23, %v1477_v62  ;;  %v1480_v18 = vmul.f32 %v2573_v8, %v1477_v62  ;;  %v3557_v34 = vld [vmem:[#allocation25_spill] sm:$0xff]  ;;  %v3558_v14 = vld [vmem:[#allocation26_spill] sm:$0xff] }
  0xfc   :  { %1379 = vrot.lane.b32.xlu1 %v1368_v55, %s2060_s23  ;;  %1377 = vrot.lane.b32.xlu0 %v1367_v39, %s2060_s23  ;;  %v1483_v20 = vmul.f32 %v2651_v3, %v1477_v62  ;;  %v3554_v55 = vld [vmem:[#allocation24_spill] sm:$0xff]  ;;  %v1456_v37 = vrot.slane %v1441_v42, 2  ;;  %v1454_v1 = vrot.slane %v1440_v54, 2  ;;  %v1482_v39 = vmul.f32 %v2657_v25, %v1477_v62 }
  0xfd   :  { %v468_v44 = vsel %vm257_vm6, %v3554_v55, %v3553_v53  ;;  %v1450_v4 = vsel %vm88_vm1, %v1448_v29, %v1449_v16  ;;  %v1493_v0 = vrot.slane %v1479_v58, 3  ;;  %v1521_v56 = vmul.f32 %v2600_v38, %v1519_v5 }
  0xfe   :  { %v3020_v40 = vpop.permute.xlu1 %817  ;;  %v3022_v35 = vpop.permute.xlu0 %815  ;;  %v1523_v49 = vmul.f32 %v2613_v2, %v1519_v5  ;;  %v469_v53 = vsel %vm257_vm6, %v3558_v14, %v3557_v34  ;;  %v1494_v55 = vrot.slane %v1481_v30, 3  ;;  %v1520_v42 = vmul.f32 %v2606_v23, %v1519_v5 }
  0xff   :  { %3555 = vst [vmem:[#allocation13_spill] sm:$0xff] %v3020_v40  ;;  %3556 = vst [vmem:[#allocation14_spill] sm:$0xff] %v3022_v35  ;;  %v3035_v62 = vmul.f32 %v2573_v8, %v1519_v5  ;;  %v474_v54 = vadd.f32 %v468_v44, %v432_v63  ;;  %v1490_v29 = vrot.slane %v1478_v19, 3  ;;  %v1491_v58 = vrot.slane %v1480_v18, 3  ;;  %v3559_v19 = vld [vmem:[#allocation27_spill] sm:$0xff]  ;;  %v3560_v18 = vld [vmem:[#allocation28_spill] sm:$0xff] }
 0x100   :  { %1418 = vrot.lane.b32.xlu1 %v1411_v36, %s2060_s23  ;;  %1416 = vrot.lane.b32.xlu0 %v1408_v24, %s2060_s23  ;;  %v1498_v6 = vrot.slane %v1483_v20, 3  ;;  %v1457_v14 = vsel %vm88_vm1, %v1452_v31, %v1456_v37  ;;  %v1455_v36 = vsel %vm88_vm1, %v1449_v16, %v1454_v1  ;;  %v1496_v24 = vrot.slane %v1482_v39, 3  ;;  %v3561_v37 = vld [vmem:[#allocation29_spill] sm:$0xff]  ;;  %v3562_v1 = vld [vmem:[#allocation30_spill] sm:$0xff] }
 0x101   :  { %v1525_v30 = vmul.f32 %v2651_v3, %v1519_v5  ;;  %v477_v60 = vadd.f32 %v3557_v34, %v435_v45  ;;  %v476_v9 = vadd.f32 %v469_v53, %v434_v10  ;;  %v1535_v27 = vrot.slane %v1521_v56, 4 }
 0x102   :  { %v3037_v35 = vpop.permute.xlu1 %856  ;;  %v3039_v40 = vpop.permute.xlu0 %854  ;;  %v1536_v63 = vrot.slane %v1523_v49, 4  ;;  %v510_v20 = vsel %vm257_vm6, %v3560_v18, %v3559_v19  ;;  %v1495_v31 = vsel %vm121_vm2, %v1493_v0, %v1494_v55  ;;  %v1532_v16 = vrot.slane %v1520_v42, 4 }
 0x103   :  { %v1533_v44 = vrot.slane %v3035_v62, 4  ;;  %v511_v45 = vsel %vm257_vm6, %v3562_v1, %v3561_v37  ;;  %v1492_v10 = vsel %vm121_vm2, %v1490_v29, %v1491_v58  ;;  %v3057_v39 = vsel %vm121_vm2, %v1494_v55, %v1498_v6  ;;  %v3563_v29 = vld [vmem:[#allocation33_spill] sm:$0xff]  ;;  %v3564_v6 = vld [vmem:[#allocation34_spill] sm:$0xff]  ;;  %v3567_v1 = vld [vmem:[#allocation35_spill] sm:$0xff] }
 0x104   :  { %1422 = vrot.lane.b32.xlu1 %v1415_v61, %s2060_s23  ;;  %1420 = vrot.lane.b32.xlu0 %v1413_v59, %s2060_s23  ;;  %v3060_v56 = vstv %s3015_s24  ;;  %v517_v61 = vadd.f32 %v3559_v19, %v475_v52  ;;  %v3068_v0 = vsel %vm121_vm2, %v1491_v58, %v1496_v24  ;;  %v1540_v34 = vrot.slane %v1525_v30, 4 }
 0x105   :  { %v1524_v53 = vmul.f32 %v2657_v25, %v1519_v5  ;;  %v516_v42 = vadd.f32 %v510_v20, %v474_v54  ;;  %v519_v62 = vadd.f32 %v3561_v37, %v477_v60  ;;  %v540_v55 = vsel %vm538_vm7, %v3564_v6, %v3563_v29  ;;  %v3565_v60 = vld [vmem:[#allocation31_spill] sm:$0xff]  ;;  %v3566_v54 = vld [vmem:[#allocation32_spill] sm:$0xff] }
 0x106   :  { %v3063_v49 = vpop.permute.xlu1 %860  ;;  %v3065_v59 = vpop.permute.xlu0 %858  ;;  %v3076_v18 = vsel %vm154_vm3, %v1535_v27, %v1536_v63  ;;  %v518_v52 = vadd.f32 %v511_v45, %v476_v9  ;;  %v3081_v58 = vsel %vm154_vm3, %v1532_v16, %v1533_v44  ;;  %v1563_v5 = vmul.f32 %v2600_v38, %v3060_v56  ;;  %v3568_v45 = vld [vmem:[#allocation36_spill] sm:$0xff] }
 0x107   :  { %v539_v24 = vsel %vm538_vm7, %v3566_v54, %v3565_v60  ;;  %v548_v27 = vadd.f32 %v3563_v29, %v519_v62  ;;  %v582_v9 = vsel %vm538_vm7, %v2754_v7, %v2752_v47  ;;  %v3104_v16 = vsel %vm154_vm3, %v1536_v63, %v1540_v34 }
 0x108   :  { %1460 = vrot.lane.b32.xlu1 %v1453_v15, %s2060_s23  ;;  %1458 = vrot.lane.b32.xlu0 %v1450_v4, %s2060_s23  ;;  %v3096_v15 = vmul.f32 %v2613_v2, %v3060_v56  ;;  %v546_v4 = vadd.f32 %v3565_v60, %v517_v61  ;;  %v547_v30 = vadd.f32 %v540_v55, %v518_v52  ;;  %v1538_v37 = vrot.slane %v1524_v53, 4 }
 0x109   :  { %v581_v62 = vsel %vm538_vm7, %v3568_v45, %v3567_v1  ;;  %v590_v7 = vadd.f32 %v2752_v47, %v548_v27  ;;  %v624_v29 = vsel %vm538_vm7, %v2801_v12, %v2799_v51  ;;  %v3115_v61 = vmul.f32 %v2606_v23, %v3060_v56 }
 0x10a   :  { %v3099_v19 = vpop.permute.xlu1 %898  ;;  %v3101_v20 = vpop.permute.xlu0 %896  ;;  %v545_v6 = vadd.f32 %v539_v24, %v516_v42  ;;  %v588_v55 = vadd.f32 %v3567_v1, %v546_v4  ;;  %v589_v63 = vadd.f32 %v582_v9, %v547_v30  ;;  %v1577_v34 = vrot.slane %v1563_v5, 5 }
 0x10b   :  { %v623_v47 = vsel %vm538_vm7, %v2778_v46, %v2776_v48  ;;  %v632_v12 = vadd.f32 %v2799_v51, %v590_v7  ;;  %v666_v53 = vsel %vm538_vm7, %v2852_v28, %v2850_v13  ;;  %v1578_v42 = vrot.slane %v3096_v15, 5 }
 0x10c   :  { %1464 = vrot.lane.b32.xlu1 %v1457_v14, %s2060_s23  ;;  %1462 = vrot.lane.b32.xlu0 %v1455_v36, %s2060_s23  ;;  %v587_v52 = vadd.f32 %v581_v62, %v545_v6  ;;  %v630_v60 = vadd.f32 %v2776_v48, %v588_v55  ;;  %v631_v14 = vadd.f32 %v624_v29, %v589_v63  ;;  %v3149_v4 = vstv %s3085_s25  ;;  %v3572_v63 = vld [vmem:[#allocation13_spill] sm:$0xff] }
 0x10d   :  { %v3133_v5 = vmul.f32 %v2573_v8, %v3060_v56  ;;  %v665_v46 = vsel %vm538_vm7, %v2828_v50, %v2826_v32  ;;  %v674_v51 = vadd.f32 %v2850_v13, %v632_v12  ;;  %v708_v28 = vsel %vm538_vm7, %v2891_v22, %v2889_v43 }
 0x10e   :  { %v3129_v54 = vpop.permute.xlu1 %902  ;;  %v901_v36 = vpop.permute.xlu0 %900  ;;  %v3143_v48 = vsel %vm154_vm3, %v1533_v44, %v1538_v37  ;;  %v629_v24 = vadd.f32 %v623_v47, %v587_v52  ;;  %v672_v27 = vadd.f32 %v2826_v32, %v630_v60  ;;  %v673_v9 = vadd.f32 %v666_v53, %v631_v14  ;;  %v3574_v60 = vld [vmem:[#allocation11_spill] sm:$0xff]  ;;  %v3575_v14 = vld [vmem:[#allocation12_spill] sm:$0xff] }
 0x10f   :  { %v707_v50 = vsel %vm538_vm7, %v2871_v33, %v2869_v57  ;;  %v716_v13 = vadd.f32 %v2889_v43, %v674_v51  ;;  %v750_v22 = vsel %vm538_vm7, %v2935_v11, %v2933_v21  ;;  %v3160_v32 = vmul.f32 %v2651_v3, %v3060_v56  ;;  %v3569_v11 = vld [vmem:[#allocation10_spill] sm:$0xff] }
 0x110   :  { %1502 = vrot.lane.b32.xlu1 %v1495_v31, %s2060_s23  ;;  %1500 = vrot.lane.b32.xlu0 %v1492_v10, %s2060_s23  ;;  %v671_v44 = vadd.f32 %v665_v46, %v629_v24  ;;  %v714_v31 = vadd.f32 %v2869_v57, %v672_v27  ;;  %v715_v10 = vadd.f32 %v708_v28, %v673_v9 }
 0x111   :  { %v3165_v1 = vmul.f32 %v2657_v25, %v3060_v56  ;;  %v749_v33 = vsel %vm538_vm7, %v2918_v17, %v2916_v41  ;;  %v758_v43 = vadd.f32 %v2933_v21, %v716_v13  ;;  %v792_v45 = vsel %vm538_vm7, %v3569_v11, %v2979_v26  ;;  %v3570_v21 = vld [vmem:[#allocation8_spill] sm:$0xff]  ;;  %v3571_v56 = vld [vmem:[#allocation9_spill] sm:$0xff] }
 0x112   :  { %v941_v30 = vpop.permute.xlu1 %940  ;;  %v939_v37 = vpop.permute.xlu0 %938  ;;  %v1579_v57 = vsel %vm187_vm4, %v1577_v34, %v1578_v42  ;;  %v713_v62 = vadd.f32 %v707_v50, %v671_v44  ;;  %v756_v7 = vadd.f32 %v2916_v41, %v714_v31  ;;  %v757_v29 = vadd.f32 %v750_v22, %v715_v10  ;;  %v3573_v34 = vld [vmem:[#allocation14_spill] sm:$0xff] }
 0x113   :  { %v1574_v17 = vrot.slane %v3115_v61, 5  ;;  %v791_v6 = vsel %vm538_vm7, %v3571_v56, %v3570_v21  ;;  %v800_v55 = vadd.f32 %v2979_v26, %v758_v43  ;;  %v821_v47 = vsel %vm819_vm8, %v3573_v34, %v3572_v63 }
 0x114   :  { %1506 = vrot.lane.b32.xlu1 %v3057_v39, %s2060_s23  ;;  %1504 = vrot.lane.b32.xlu0 %v3068_v0, %s2060_s23  ;;  %v1575_v41 = vrot.slane %v3133_v5, 5  ;;  %v755_v12 = vadd.f32 %v749_v33, %v713_v62  ;;  %v798_v39 = vadd.f32 %v3570_v21, %v756_v7  ;;  %v799_v53 = vadd.f32 %v792_v45, %v757_v29 }
 0x115   :  { %v3194_v61 = vmul.f32 %v2600_v38, %v3149_v4  ;;  %v820_v26 = vsel %vm819_vm8, %v3575_v14, %v3574_v60  ;;  %v829_v46 = vadd.f32 %v3572_v63, %v800_v55  ;;  %v863_v5 = vsel %vm819_vm8, %v3065_v59, %v3063_v49 }
 0x116   :  { %v945_v52 = vpop.permute.xlu1 %944  ;;  %v943_v0 = vpop.permute.xlu0 %942  ;;  %v797_v28 = vadd.f32 %v791_v6, %v755_v12  ;;  %v828_v24 = vadd.f32 %v821_v47, %v799_v53  ;;  %v1582_v38 = vrot.slane %v3160_v32, 5  ;;  %v3211_v27 = vmul.f32 %v2613_v2, %v3149_v4 }
 0x117   :  { %v947_v51 = vsel %vm819_vm8, %v943_v0, %v945_v52  ;;  %v827_v9 = vadd.f32 %v3574_v60, %v798_v39  ;;  %v862_v59 = vsel %vm819_vm8, %v3039_v40, %v3037_v35  ;;  %v871_v50 = vadd.f32 %v3063_v49, %v829_v46 }
 0x118   :  { %1544 = vrot.lane.b32.xlu1 %v3076_v18, %s2060_s23  ;;  %1542 = vrot.lane.b32.xlu0 %v3081_v58, %s2060_s23  ;;  %v905_v18 = vsel %vm819_vm8, %v901_v36, %v3129_v54  ;;  %v826_v13 = vadd.f32 %v820_v26, %v797_v28  ;;  %v870_v22 = vadd.f32 %v863_v5, %v828_v24  ;;  %v1580_v2 = vrot.slane %v3165_v1, 5 }
 0x119   :  { %v1576_v32 = vsel %vm187_vm4, %v1574_v17, %v1575_v41  ;;  %v869_v31 = vadd.f32 %v3037_v35, %v827_v9  ;;  %v904_v10 = vsel %vm819_vm8, %v3101_v20, %v3099_v19  ;;  %v913_v40 = vadd.f32 %v3129_v54, %v871_v50  ;;  %v3273_v9 = vld [vmem:[%s3456_s1] sm:$0xff] }
 0x11a   :  { %v983_v58 = vpop.permute.xlu1 %982  ;;  %v981_v44 = vpop.permute.xlu0 %980  ;;  %v868_v33 = vadd.f32 %v862_v59, %v826_v13  ;;  %v912_v36 = vadd.f32 %v905_v18, %v870_v22  ;;  %v1604_v1 = vmul.f32 %v2606_v23, %v3149_v4  ;;  %v946_v43 = vsel %vm819_vm8, %v939_v37, %v941_v30  ;;  %v3282_v13 = vld [vmem:[%s3456_s1 + $0x18] sm:$0xff] }
 0x11b   :  { %v988_v49 = vsel %vm819_vm8, %v981_v44, %v983_v58  ;;  %v911_v35 = vadd.f32 %v3099_v19, %v869_v31  ;;  %v955_v20 = vadd.f32 %v945_v52, %v913_v40  ;;  %v1606_v54 = vmul.f32 %v2573_v8, %v3149_v4  ;;  %v3289_v44 = vld [vmem:[%s3456_s1 + $0x10] sm:$0xff] }
 0x11c   :  { %1548 = vrot.lane.b32.xlu1 %v3104_v16, %s2060_s23  ;;  %1546 = vrot.lane.b32.xlu0 %v3143_v48, %s2060_s23  ;;  %v910_v11 = vadd.f32 %v904_v10, %v868_v33  ;;  %v954_v45 = vadd.f32 %v947_v51, %v912_v36  ;;  %v1583_v16 = vsel %vm187_vm4, %v1578_v42, %v1582_v38  ;;  %v1619_v48 = vrot.slane %v3194_v61, 6  ;;  %v3267_v38 = vld [vmem:[%s3456_s1 + $0x8] sm:$0xff] }
 0x11d   :  { %v953_v29 = vadd.f32 %v941_v30, %v911_v35  ;;  %v1581_v37 = vsel %vm187_vm4, %v1575_v41, %v1580_v2  ;;  %v1620_v8 = vrot.slane %v3211_v27, 6  ;;  %v1609_v15 = vmul.f32 %v2651_v3, %v3149_v4  ;;  %v3298_v36 = vld [vmem:[%s3456_s1 + $0x28] sm:$0x3f] }
 0x11e   :  { %v987_v62 = vpop.permute.xlu1 %986  ;;  %v985_v7 = vpop.permute.xlu0 %984  ;;  %v952_v17 = vadd.f32 %v946_v43, %v910_v11  ;;  %v1616_v56 = vrot.slane %v1604_v1, 6  ;;  %v1617_v30 = vrot.slane %v1606_v54, 6  ;;  %v1608_v6 = vmul.f32 %v2657_v25, %v3149_v4 }
 0x11f   :  { %v997_v23 = vadd.f32 %v987_v62, %v955_v20  ;;  %v989_v19 = vsel %vm819_vm8, %v985_v7, %v987_v62  ;;  %v995_v42 = vadd.f32 %v983_v58, %v953_v29  ;;  %v1621_v3 = vsel %vm220_vm5, %v1619_v48, %v1620_v8  ;;  %v3309_v62 = vld [vmem:[%s3456_s1 + $0x20] sm:$0x3f]  ;;  %s3329_s1 = sld [smem:[#allocation2 + $0x206]] }
 0x120   :  { %v996_v21 = vadd.f32 %v989_v19, %v954_v45  ;;  %1586 = vrot.lane.b32.xlu1 %v1579_v57, %s2060_s23  ;;  %1584 = vrot.lane.b32.xlu0 %v1576_v32, %s2060_s23  ;;  %v994_v55 = vadd.f32 %v988_v49, %v952_v17  ;;  %v1618_v12 = vsel %vm220_vm5, %v1616_v56, %v1617_v30  ;;  %v1624_v39 = vrot.slane %v1609_v15, 6 }
 0x121   :  { %v1622_v53 = vrot.slane %v1608_v6, 6  ;;  %v1645_v60 = vstv %s1988_s26  ;;  %v1674_v46 = vstv %s1989_s27  ;;  %v1716_v54 = vstv %s3259_s28 }
 0x122   :  { %v1025_v63 = vpop.permute.xlu1 %1024  ;;  %v1023_v34 = vpop.permute.xlu0 %1022  ;;  %v1625_v14 = vsel %vm220_vm5, %v1620_v8, %v1624_v39  ;;  %v1647_v27 = vmul.f32 %v3267_v38, %v1645_v60  ;;  %v1646_v59 = vmul.f32 %v3273_v9, %v1645_v60  ;;  %v1676_v18 = vmul.f32 %v3267_v38, %v1674_v46 }
 0x123   :  { %v1037_v47 = vadd.f32 %v1025_v63, %v995_v42  ;;  %v1030_v57 = vsel %vm819_vm8, %v1023_v34, %v1025_v63  ;;  %v1623_v26 = vsel %vm220_vm5, %v1617_v30, %v1622_v53  ;;  %v1678_v22 = vmul.f32 %v3282_v13, %v1674_v46 }
 0x124   :  { %v1036_v41 = vadd.f32 %v1030_v57, %v994_v55  ;;  %1590 = vrot.lane.b32.xlu1 %v1583_v16, %s2060_s23  ;;  %1588 = vrot.lane.b32.xlu0 %v1581_v37, %s2060_s23  ;;  %v1675_v58 = vmul.f32 %v3273_v9, %v1674_v46  ;;  %v1677_v32 = vmul.f32 %v3289_v44, %v1674_v46  ;;  %v1690_v43 = vrot.slane %v1676_v18, 1 }
 0x125   :  { %v1649_v10 = vmul.f32 %v3282_v13, %v1645_v60  ;;  %v1648_v33 = vmul.f32 %v3289_v44, %v1645_v60  ;;  %v1680_v1 = vmul.f32 %v3298_v36, %v1674_v46  ;;  %v1691_v20 = vrot.slane %v1678_v22, 1 }
 0x126   :  { %v1029_v52 = vpop.permute.xlu1 %1028  ;;  %v1027_v25 = vpop.permute.xlu0 %1026  ;;  %v1687_v11 = vrot.slane %v1675_v58, 1  ;;  %v1688_v45 = vrot.slane %v1677_v32, 1  ;;  %v1679_v7 = vmul.f32 %v3309_v62, %v1674_v46  ;;  %v1718_v37 = vmul.f32 %v3267_v38, %v1716_v54 }
 0x127   :  { %v1039_v4 = vadd.f32 %v1029_v52, %v997_v23  ;;  %v1031_v0 = vsel %vm819_vm8, %v1027_v25, %v1029_v52  ;;  %v1695_v19 = vrot.slane %v1680_v1, 1  ;;  %v1720_v8 = vmul.f32 %v3282_v13, %v1716_v54 }
 0x128   :  { %v1038_v61 = vadd.f32 %v1031_v0, %v996_v21  ;;  %1628 = vrot.lane.b32.xlu1 %v1621_v3, %s2060_s23  ;;  %1626 = vrot.lane.b32.xlu0 %v1618_v12, %s2060_s23  ;;  %v1692_v21 = vsel %vm55_vm0, %v1690_v43, %v1691_v20  ;;  %v1689_v15 = vsel %vm55_vm0, %v1687_v11, %v1688_v45  ;;  %v1693_v42 = vrot.slane %v1679_v7, 1 }
 0x129   :  { %v1717_v56 = vmul.f32 %v3273_v9, %v1716_v54  ;;  %v1719_v30 = vmul.f32 %v3289_v44, %v1716_v54  ;;  %v1732_v57 = vrot.slane %v1718_v37, 2  ;;  %v1722_v3 = vmul.f32 %v3298_v36, %v1716_v54 }
 0x12a   :  { %v1067_v5 = vpop.permute.xlu1 %1066  ;;  %v1065_v51 = vpop.permute.xlu0 %1064  ;;  %v1721_v12 = vmul.f32 %v3309_v62, %v1716_v54  ;;  %v1758_v39 = vstv %s3304_s12  ;;  %v1694_v53 = vsel %vm55_vm0, %v1688_v45, %v1693_v42  ;;  %v1733_v52 = vrot.slane %v1720_v8, 2 }
 0x12b   :  { %v1079_v28 = vadd.f32 %v1067_v5, %v1037_v47  ;;  %v1072_v24 = vsel %vm819_vm8, %v1065_v51, %v1067_v5  ;;  %v1696_v47 = vsel %vm55_vm0, %v1691_v20, %v1695_v19  ;;  %v1729_v25 = vrot.slane %v1717_v56, 2 }
 0x12c   :  { %v1078_v50 = vadd.f32 %v1072_v24, %v1036_v41  ;;  %1632 = vrot.lane.b32.xlu1 %v1625_v14, %s2060_s23  ;;  %1630 = vrot.lane.b32.xlu0 %v1623_v26, %s2060_s23  ;;  %v1760_v26 = vmul.f32 %v3267_v38, %v1758_v39  ;;  %v1762_v46 = vmul.f32 %v3282_v13, %v1758_v39  ;;  %v1737_v51 = vrot.slane %v1722_v3, 2 }
 0x12d   :  { %v1734_v24 = vsel %vm88_vm1, %v1732_v57, %v1733_v52  ;;  %v1764_v58 = vmul.f32 %v3298_v36, %v1758_v39  ;;  %v1763_v43 = vmul.f32 %v3309_v62, %v1758_v39  ;;  %v1800_v20 = vstv %s3329_s1 }
 0x12e   :  { %v1071_v2 = vpop.permute.xlu1 %1070  ;;  %v1069_v31 = vpop.permute.xlu0 %1068  ;;  %v1804_v19 = vmul.f32 %v3282_v13, %v1800_v20  ;;  %v1803_v8 = vmul.f32 %v3289_v44, %v1800_v20  ;;  %v1806_v57 = vmul.f32 %v3298_v36, %v1800_v20 }
 0x12f   :  { %v1081_v40 = vadd.f32 %v1071_v2, %v1039_v4  ;;  %v1073_v49 = vsel %vm819_vm8, %v1069_v31, %v1071_v2  ;;  %v1730_v4 = vrot.slane %v1719_v30, 2  ;;  %v1774_v31 = vrot.slane %v1760_v26, 3 }
 0x130   :  { %v1080_v35 = vadd.f32 %v1073_v49, %v1038_v61  ;;  %1656 = vrot.lane.b32.xlu1 %v1647_v27, %s2061_s11  ;;  %1654 = vrot.lane.b32.xlu0 %v1646_v59, %s2061_s11  ;;  %v1759_v59 = vmul.f32 %v3273_v9, %v1758_v39  ;;  %v1738_v49 = vsel %vm88_vm1, %v1733_v52, %v1737_v51 }
 0x131   :  { %v1731_v27 = vsel %vm88_vm1, %v1729_v25, %v1730_v4 }
 0x132   :  { %v1095_v16 = vpop.permute.xlu1 %1094  ;;  %v1093_v48 = vpop.permute.xlu0 %1092  ;;  %v1771_v1 = vrot.slane %v1759_v59, 3 }
 0x133   :  { %v1108_v29 = vadd.f32 %v1095_v16, %v1079_v28  ;;  %v1101_v23 = vsel %vm1100_vm9, %v1093_v48, %v1095_v16  ;;  %v1735_v28 = vrot.slane %v1721_v12, 2  ;;  %v1779_v48 = vrot.slane %v1764_v58, 3 }
 0x134   :  { %v1107_v17 = vadd.f32 %v1101_v23, %v1078_v50  ;;  %1660 = vrot.lane.b32.xlu1 %v1649_v10, %s2061_s11  ;;  %1658 = vrot.lane.b32.xlu0 %v1648_v33, %s2061_s11  ;;  %v1761_v50 = vmul.f32 %v3289_v44, %v1758_v39  ;;  %v1775_v10 = vrot.slane %v1762_v46, 3  ;;  %v1802_v23 = vmul.f32 %v3267_v38, %v1800_v20 }
 0x135   :  { %v1736_v33 = vsel %vm88_vm1, %v1730_v4, %v1735_v28  ;;  %v1814_v12 = vrot.slane %v1803_v8, 4  ;;  %v1805_v39 = vmul.f32 %v3309_v62, %v1800_v20 }
 0x136   :  { %v1099_v6 = vpop.permute.xlu1 %1098  ;;  %v1097_v55 = vpop.permute.xlu0 %1096  ;;  %v1776_v16 = vsel %vm121_vm2, %v1774_v31, %v1775_v10 }
 0x137   :  { %v1110_v63 = vadd.f32 %v1099_v6, %v1081_v40  ;;  %v1102_v34 = vsel %vm1100_vm9, %v1097_v55, %v1099_v6  ;;  %v1780_v6 = vsel %vm121_vm2, %v1775_v10, %v1779_v48  ;;  %v1842_v55 = vstv %s1993_s15 }
 0x138   :  { %v1109_v41 = vadd.f32 %v1102_v34, %v1080_v35  ;;  %1699 = vrot.lane.b32.xlu1 %v1692_v21, %s2061_s11  ;;  %1697 = vrot.lane.b32.xlu0 %v1689_v15, %s2061_s11  ;;  %v1772_v35 = vrot.slane %v1761_v50, 3  ;;  %v1801_v21 = vmul.f32 %v3273_v9, %v1800_v20  ;;  %v1816_v34 = vrot.slane %v1802_v23, 4 }
 0x139   :  { %v1846_v26 = vmul.f32 %v3282_v13, %v1842_v55  ;;  %v1843_v51 = vmul.f32 %v3273_v9, %v1842_v55  ;;  %v1845_v28 = vmul.f32 %v3289_v44, %v1842_v55  ;;  %v1847_v31 = vmul.f32 %v3309_v62, %v1842_v55 }
 0x13a   :  { %v1138_v0 = vpop.permute.xlu1 %1137  ;;  %v1136_v61 = vpop.permute.xlu0 %1135  ;;  %v1773_v37 = vsel %vm121_vm2, %v1771_v1, %v1772_v35  ;;  %v1813_v3 = vrot.slane %v1801_v21, 4 }
 0x13b   :  { %v1150_v60 = vadd.f32 %v1138_v0, %v1108_v29  ;;  %v1143_v14 = vsel %vm1100_vm9, %v1136_v61, %v1138_v0  ;;  %v1844_v0 = vmul.f32 %v3267_v38, %v1842_v55 }
 0x13c   :  { %v1149_v5 = vadd.f32 %v1143_v14, %v1107_v17  ;;  %1703 = vrot.lane.b32.xlu1 %v1696_v47, %s2061_s11  ;;  %1701 = vrot.lane.b32.xlu0 %v1694_v53, %s2061_s11  ;;  %v1777_v17 = vrot.slane %v1763_v43, 3  ;;  %v1817_v47 = vrot.slane %v1804_v19, 4  ;;  %v1821_v14 = vrot.slane %v1806_v57, 4 }
 0x13d   :  { %v1815_v46 = vsel %vm154_vm3, %v1813_v3, %v1814_v12 }
 0x13e   :  { %v1142_v18 = vpop.permute.xlu1 %1141  ;;  %v1140_v22 = vpop.permute.xlu0 %1139 }
 0x13f   :  { %v1152_v32 = vadd.f32 %v1142_v18, %v1110_v63  ;;  %v1144_v2 = vsel %vm1100_vm9, %v1140_v22, %v1142_v18  ;;  %v1858_v18 = vrot.slane %v1844_v0, 5  ;;  %v1848_v22 = vmul.f32 %v3298_v36, %v1842_v55 }
 0x140   :  { %v1151_v40 = vadd.f32 %v1144_v2, %v1109_v41  ;;  %1741 = vrot.lane.b32.xlu1 %v1734_v24, %s2061_s11  ;;  %1739 = vrot.lane.b32.xlu0 %v1731_v27, %s2061_s11  ;;  %v1778_v41 = vsel %vm121_vm2, %v1772_v35, %v1777_v17  ;;  %v1859_v2 = vrot.slane %v1846_v26, 5 }
 0x142   :  { %v1180_v54 = vpop.permute.xlu1 %1179  ;;  %v1178_v11 = vpop.permute.xlu0 %1177 }
 0x143   :  { %v1192_v45 = vadd.f32 %v1180_v54, %v1150_v60  ;;  %v1185_v7 = vsel %vm1100_vm9, %v1178_v11, %v1180_v54  ;;  %v1818_v60 = vsel %vm154_vm3, %v1816_v34, %v1817_v47  ;;  %v1863_v54 = vrot.slane %v1848_v22, 5 }
 0x144   :  { %v1191_v29 = vadd.f32 %v1185_v7, %v1149_v5  ;;  %1745 = vrot.lane.b32.xlu1 %v1738_v49, %s2061_s11  ;;  %1743 = vrot.lane.b32.xlu0 %v1736_v33, %s2061_s11  ;;  %v1819_v5 = vrot.slane %v1805_v39, 4  ;;  %v1856_v49 = vrot.slane %v1845_v28, 5  ;;  %v1884_v33 = vstv %s3364_s16 }
 0x145   :  { %v1861_v7 = vrot.slane %v1847_v31, 5  ;;  %v1885_v23 = vmul.f32 %v3273_v9, %v1884_v33  ;;  %v1887_v19 = vmul.f32 %v3289_v44, %v1884_v33 }
 0x146   :  { %v1184_v15 = vpop.permute.xlu1 %1183  ;;  %v1182_v42 = vpop.permute.xlu0 %1181  ;;  %v1820_v10 = vsel %vm154_vm3, %v1814_v12, %v1819_v5 }
 0x147   :  { %v1194_v56 = vadd.f32 %v1184_v15, %v1152_v32  ;;  %v1186_v30 = vsel %vm1100_vm9, %v1182_v42, %v1184_v15  ;;  %v1822_v32 = vsel %vm154_vm3, %v1817_v47, %v1821_v14  ;;  %v1864_v15 = vsel %vm187_vm4, %v1859_v2, %v1863_v54 }
 0x148   :  { %v1193_v63 = vadd.f32 %v1186_v30, %v1151_v40  ;;  %1783 = vrot.lane.b32.xlu1 %v1776_v16, %s2061_s11  ;;  %1781 = vrot.lane.b32.xlu0 %v1773_v37, %s2061_s11  ;;  %v1855_v40 = vrot.slane %v1843_v51, 5  ;;  %v1886_v16 = vmul.f32 %v3267_v38, %v1884_v33  ;;  %v1862_v38 = vsel %vm187_vm4, %v1856_v49, %v1861_v7 }
 0x149   :  { %v1897_v30 = vrot.slane %v1885_v23, 6  ;;  %v1898_v44 = vrot.slane %v1887_v19, 6 }
 0x14a   :  { %v1222_v53 = vpop.permute.xlu1 %1221  ;;  %v1220_v52 = vpop.permute.xlu0 %1219  ;;  %v1857_v48 = vsel %vm187_vm4, %v1855_v40, %v1856_v49 }
 0x14b   :  { %v1234_v25 = vadd.f32 %v1222_v53, %v1192_v45  ;;  %v1227_v4 = vsel %vm1100_vm9, %v1220_v52, %v1222_v53  ;;  %v1860_v45 = vsel %vm187_vm4, %v1858_v18, %v1859_v2  ;;  %v1899_v3 = vsel %vm220_vm5, %v1897_v30, %v1898_v44 }
 0x14c   :  { %v1233_v61 = vadd.f32 %v1227_v4, %v1191_v29  ;;  %1787 = vrot.lane.b32.xlu1 %v1780_v6, %s2061_s11  ;;  %1785 = vrot.lane.b32.xlu0 %v1778_v41, %s2061_s11  ;;  %v1888_v29 = vmul.f32 %v3282_v13, %v1884_v33  ;;  %v1890_v13 = vmul.f32 %v3298_v36, %v1884_v33 }
 0x14d   :  { %v1889_v6 = vmul.f32 %v3309_v62, %v1884_v33 }
 0x14e   :  { %v1226_v24 = vpop.permute.xlu1 %1225  ;;  %v1224_v27 = vpop.permute.xlu0 %1223  ;;  %v1901_v9 = vrot.slane %v1888_v29, 6  ;;  %v1905_v36 = vrot.slane %v1890_v13, 6 }
 0x14f   :  { %v1236_v59 = vadd.f32 %v1226_v24, %v1194_v56  ;;  %v1228_v50 = vsel %vm1100_vm9, %v1224_v27, %v1226_v24  ;;  %v1900_v56 = vrot.slane %v1886_v16, 6  ;;  %v1903_v12 = vrot.slane %v1889_v6, 6 }
 0x150   :  { %v1235_v58 = vadd.f32 %v1228_v50, %v1193_v63  ;;  %1825 = vrot.lane.b32.xlu1 %v1818_v60, %s2061_s11  ;;  %1823 = vrot.lane.b32.xlu0 %v1815_v46, %s2061_s11  ;;  %v1906_v4 = vsel %vm220_vm5, %v1901_v9, %v1905_v36 }
 0x151   :  { %v1902_v41 = vsel %vm220_vm5, %v1900_v56, %v1901_v9  ;;  %v1904_v0 = vsel %vm220_vm5, %v1898_v44, %v1903_v12 }
 0x152   :  { %v1264_v1 = vpop.permute.xlu1 %1263  ;;  %v1262_v35 = vpop.permute.xlu0 %1261 }
 0x153   :  { %v1276_v43 = vadd.f32 %v1264_v1, %v1234_v25  ;;  %v1269_v20 = vsel %vm1100_vm9, %v1262_v35, %v1264_v1 }
 0x154   :  { %v1275_v11 = vadd.f32 %v1269_v20, %v1233_v61  ;;  %1829 = vrot.lane.b32.xlu1 %v1822_v32, %s2061_s11  ;;  %1827 = vrot.lane.b32.xlu0 %v1820_v10, %s2061_s11 }
 0x156   :  { %v1268_v37 = vpop.permute.xlu1 %1267  ;;  %v1266_v17 = vpop.permute.xlu0 %1265 }
 0x157   :  { %v1278_v21 = vadd.f32 %v1268_v37, %v1236_v59  ;;  %v1270_v8 = vsel %vm1100_vm9, %v1266_v17, %v1268_v37 }
 0x158   :  { %v1277_v42 = vadd.f32 %v1270_v8, %v1235_v58  ;;  %1867 = vrot.lane.b32.xlu1 %v1860_v45, %s2061_s11  ;;  %1865 = vrot.lane.b32.xlu0 %v1857_v48, %s2061_s11 }
 0x15a   :  { %v1306_v55 = vpop.permute.xlu1 %1305  ;;  %v1304_v63 = vpop.permute.xlu0 %1303 }
 0x15b   :  { %v1318_v34 = vadd.f32 %v1306_v55, %v1276_v43  ;;  %v1311_v47 = vsel %vm1100_vm9, %v1304_v63, %v1306_v55 }
 0x15c   :  { %v1317_v57 = vadd.f32 %v1311_v47, %v1275_v11  ;;  %1871 = vrot.lane.b32.xlu1 %v1864_v15, %s2061_s11  ;;  %1869 = vrot.lane.b32.xlu0 %v1862_v38, %s2061_s11 }
 0x15e   :  { %v1310_v39 = vpop.permute.xlu1 %1309  ;;  %v1308_v53 = vpop.permute.xlu0 %1307 }
 0x15f   :  { %v1320_v52 = vadd.f32 %v1310_v39, %v1278_v21  ;;  %v1312_v62 = vsel %vm1100_vm9, %v1308_v53, %v1310_v39 }
 0x160   :  { %v1319_v25 = vadd.f32 %v1312_v62, %v1277_v42  ;;  %1909 = vrot.lane.b32.xlu1 %v1902_v41, %s2061_s11  ;;  %1907 = vrot.lane.b32.xlu0 %v1899_v3, %s2061_s11 }
 0x162   :  { %v1348_v61 = vpop.permute.xlu1 %1347  ;;  %v1346_v60 = vpop.permute.xlu0 %1345 }
 0x163   :  { %v1360_v14 = vadd.f32 %v1348_v61, %v1318_v34  ;;  %v1353_v26 = vsel %vm1100_vm9, %v1346_v60, %v1348_v61 }
 0x164   :  { %v1359_v46 = vadd.f32 %v1353_v26, %v1317_v57  ;;  %1913 = vrot.lane.b32.xlu1 %v1906_v4, %s2061_s11  ;;  %1911 = vrot.lane.b32.xlu0 %v1904_v0, %s2061_s11 }
 0x166   :  { %v1352_v5 = vpop.permute.xlu1 %1351  ;;  %v1350_v51 = vpop.permute.xlu0 %1349 }
 0x167   :  { %v1362_v28 = vadd.f32 %v1352_v5, %v1320_v52  ;;  %v1354_v24 = vsel %vm1100_vm9, %v1350_v51, %v1352_v5 }
 0x168   :  { %v1361_v27 = vadd.f32 %v1354_v24, %v1319_v25 }
 0x16a   :  { %v1376_v59 = vpop.permute.xlu1 %1375  ;;  %v1374_v50 = vpop.permute.xlu0 %1373 }
 0x16b   :  { %v1389_v18 = vadd.f32 %v1376_v59, %v1360_v14  ;;  %v1382_v22 = vsel %vm1381_vm10, %v1374_v50, %v1376_v59 }
 0x16c   :  { %v1388_v58 = vadd.f32 %v1382_v22, %v1359_v46 }
 0x16e   :  { %v1380_v32 = vpop.permute.xlu1 %1379  ;;  %v1378_v2 = vpop.permute.xlu0 %1377 }
 0x16f   :  { %v1391_v31 = vadd.f32 %v1380_v32, %v1362_v28  ;;  %v1383_v10 = vsel %vm1381_vm10, %v1378_v2, %v1380_v32 }
 0x170   :  { %v1390_v40 = vadd.f32 %v1383_v10, %v1361_v27 }
 0x172   :  { %v1419_v49 = vpop.permute.xlu1 %1418  ;;  %v1417_v33 = vpop.permute.xlu0 %1416 }
 0x173   :  { %v1431_v1 = vadd.f32 %v1419_v49, %v1389_v18  ;;  %v1424_v35 = vsel %vm1381_vm10, %v1417_v33, %v1419_v49 }
 0x174   :  { %v1430_v43 = vadd.f32 %v1424_v35, %v1388_v58 }
 0x176   :  { %v1423_v20 = vpop.permute.xlu1 %1422  ;;  %v1421_v54 = vpop.permute.xlu0 %1420 }
 0x177   :  { %v1433_v11 = vadd.f32 %v1423_v20, %v1391_v31  ;;  %v1425_v45 = vsel %vm1381_vm10, %v1421_v54, %v1423_v20 }
 0x178   :  { %v1432_v7 = vadd.f32 %v1425_v45, %v1390_v40 }
 0x17a   :  { %v1461_v16 = vpop.permute.xlu1 %1460  ;;  %v1459_v48 = vpop.permute.xlu0 %1458 }
 0x17b   :  { %v1473_v29 = vadd.f32 %v1461_v16, %v1431_v1  ;;  %v1466_v23 = vsel %vm1381_vm10, %v1459_v48, %v1461_v16 }
 0x17c   :  { %v1472_v19 = vadd.f32 %v1466_v23, %v1430_v43 }
 0x17e   :  { %v1465_v37 = vpop.permute.xlu1 %1464  ;;  %v1463_v17 = vpop.permute.xlu0 %1462 }
 0x17f   :  { %v1475_v21 = vadd.f32 %v1465_v37, %v1433_v11  ;;  %v1467_v8 = vsel %vm1381_vm10, %v1463_v17, %v1465_v37 }
 0x180   :  { %v1474_v15 = vadd.f32 %v1467_v8, %v1432_v7 }
 0x182   :  { %v1503_v42 = vpop.permute.xlu1 %1502  ;;  %v1501_v38 = vpop.permute.xlu0 %1500 }
 0x183   :  { %v1508_v51 = vsel %vm1381_vm10, %v1501_v38, %v1503_v42  ;;  %v1515_v27 = vadd.f32 %v1503_v42, %v1473_v29 }
 0x184   :  { %v1514_v50 = vadd.f32 %v1508_v51, %v1472_v19 }
 0x186   :  { %v1507_v56 = vpop.permute.xlu1 %1506  ;;  %v1505_v13 = vpop.permute.xlu0 %1504 }
 0x187   :  { %v1509_v18 = vsel %vm1381_vm10, %v1505_v13, %v1507_v56  ;;  %v1517_v10 = vadd.f32 %v1507_v56, %v1475_v21 }
 0x188   :  { %v1516_v1 = vadd.f32 %v1509_v18, %v1474_v15 }
 0x18a   :  { %v1545_v9 = vpop.permute.xlu1 %1544  ;;  %v1543_v30 = vpop.permute.xlu0 %1542 }
 0x18b   :  { %v1550_v59 = vsel %vm1381_vm10, %v1543_v30, %v1545_v9  ;;  %v1557_v22 = vadd.f32 %v1545_v9, %v1515_v27 }
 0x18c   :  { %v1556_v32 = vadd.f32 %v1550_v59, %v1514_v50 }
 0x18e   :  { %v1549_v44 = vpop.permute.xlu1 %1548  ;;  %v1547_v6 = vpop.permute.xlu0 %1546 }
 0x18f   :  { %v1551_v40 = vsel %vm1381_vm10, %v1547_v6, %v1549_v44  ;;  %v1559_v43 = vadd.f32 %v1549_v44, %v1517_v10 }
 0x190   :  { %v1558_v45 = vadd.f32 %v1551_v40, %v1516_v1 }
 0x192   :  { %v1587_v55 = vpop.permute.xlu1 %1586  ;;  %v1585_v63 = vpop.permute.xlu0 %1584 }
 0x193   :  { %v1592_v58 = vsel %vm1381_vm10, %v1585_v63, %v1587_v55  ;;  %v1599_v49 = vadd.f32 %v1587_v55, %v1557_v22 }
 0x194   :  { %v1598_v35 = vadd.f32 %v1592_v58, %v1556_v32 }
 0x196   :  { %v1591_v34 = vpop.permute.xlu1 %1590  ;;  %v1589_v47 = vpop.permute.xlu0 %1588 }
 0x197   :  { %v1593_v20 = vsel %vm1381_vm10, %v1589_v47, %v1591_v34  ;;  %v1601_v29 = vadd.f32 %v1591_v34, %v1559_v43 }
 0x198   :  { %v1600_v17 = vadd.f32 %v1593_v20, %v1558_v45 }
 0x19a   :  { %v1629_v57 = vpop.permute.xlu1 %1628  ;;  %v1627_v41 = vpop.permute.xlu0 %1626 }
 0x19b   :  { %v1634_v33 = vsel %vm1381_vm10, %v1627_v41, %v1629_v57  ;;  %v1641_v54 = vadd.f32 %v1629_v57, %v1599_v49 }
 0x19c   :  { %v1640_v7 = vadd.f32 %v1634_v33, %v1598_v35 }
 0x19e   :  { %v1633_v3 = vpop.permute.xlu1 %1632  ;;  %v1631_v36 = vpop.permute.xlu0 %1630 }
 0x19f   :  { %v1635_v23 = vsel %vm1381_vm10, %v1631_v36, %v1633_v3  ;;  %v1643_v8 = vadd.f32 %v1633_v3, %v1601_v29 }
 0x1a0   :  { %v1642_v56 = vadd.f32 %v1635_v23, %v1600_v17 }
 0x1a2   :  { %v1657_v12 = vpop.permute.xlu1 %1656  ;;  %v1655_v39 = vpop.permute.xlu0 %1654 }
 0x1a3   :  { %v1663_v11 = vsel %vm1662_vm11, %v1655_v39, %v1657_v12  ;;  %v1670_v19 = vadd.f32 %v1657_v12, %v1641_v54 }
 0x1a4   :  { %v1669_v21 = vadd.f32 %v1663_v11, %v1640_v7 }
 0x1a6   :  { %v1661_v53 = vpop.permute.xlu1 %1660  ;;  %v1659_v52 = vpop.permute.xlu0 %1658 }
 0x1a7   :  { %v1664_v15 = vsel %vm1662_vm11, %v1659_v52, %v1661_v53  ;;  %v1672_v44 = vadd.f32 %v1661_v53, %v1643_v8 }
 0x1a8   :  { %v1671_v34 = vadd.f32 %v1664_v15, %v1642_v56 }
 0x1aa   :  { %v1700_v62 = vpop.permute.xlu1 %1699  ;;  %v1698_v25 = vpop.permute.xlu0 %1697 }
 0x1ab   :  { %v1705_v37 = vsel %vm1662_vm11, %v1698_v25, %v1700_v62  ;;  %v1712_v42 = vadd.f32 %v1700_v62, %v1670_v19 }
 0x1ac   :  { %v1711_v13 = vadd.f32 %v1705_v37, %v1669_v21 }
 0x1ae   :  { %v1704_v4 = vpop.permute.xlu1 %1703  ;;  %v1702_v0 = vpop.permute.xlu0 %1701 }
 0x1af   :  { %v1706_v6 = vsel %vm1662_vm11, %v1702_v0, %v1704_v4  ;;  %v1714_v57 = vadd.f32 %v1704_v4, %v1672_v44 }
 0x1b0   :  { %v1713_v12 = vadd.f32 %v1706_v6, %v1671_v34 }
 0x1b2   :  { %v1742_v61 = vpop.permute.xlu1 %1741  ;;  %v1740_v60 = vpop.permute.xlu0 %1739 }
 0x1b3   :  { %v1747_v38 = vsel %vm1662_vm11, %v1740_v60, %v1742_v61  ;;  %v1754_v55 = vadd.f32 %v1742_v61, %v1712_v42 }
 0x1b4   :  { %v1753_v47 = vadd.f32 %v1747_v38, %v1711_v13 }
 0x1b6   :  { %v1746_v14 = vpop.permute.xlu1 %1745  ;;  %v1744_v26 = vpop.permute.xlu0 %1743 }
 0x1b7   :  { %v1748_v41 = vsel %vm1662_vm11, %v1744_v26, %v1746_v14  ;;  %v1756_v25 = vadd.f32 %v1746_v14, %v1714_v57 }
 0x1b8   :  { %v1755_v61 = vadd.f32 %v1748_v41, %v1713_v12 }
 0x1ba   :  { %v1784_v46 = vpop.permute.xlu1 %1783  ;;  %v1782_v5 = vpop.permute.xlu0 %1781 }
 0x1bb   :  { %v1789_v63 = vsel %vm1662_vm11, %v1782_v5, %v1784_v46  ;;  %v1796_v3 = vadd.f32 %v1784_v46, %v1754_v55 }
 0x1bc   :  { %v1795_v39 = vadd.f32 %v1789_v63, %v1753_v47 }
 0x1be   :  { %v1788_v28 = vpop.permute.xlu1 %1787  ;;  %v1786_v24 = vpop.permute.xlu0 %1785 }
 0x1bf   :  { %v1790_v53 = vsel %vm1662_vm11, %v1786_v24, %v1788_v28  ;;  %v1798_v51 = vadd.f32 %v1788_v28, %v1756_v25 }
 0x1c0   :  { %v1797_v26 = vadd.f32 %v1790_v53, %v1755_v61 }
 0x1c2   :  { %v1826_v2 = vpop.permute.xlu1 %1825  ;;  %v1824_v31 = vpop.permute.xlu0 %1823 }
 0x1c3   :  { %v1831_v36 = vsel %vm1662_vm11, %v1824_v31, %v1826_v2  ;;  %v1838_v60 = vadd.f32 %v1826_v2, %v1796_v3 }
 0x1c4   :  { %v1837_v5 = vadd.f32 %v1831_v36, %v1795_v39 }
 0x1c6   :  { %v1830_v16 = vpop.permute.xlu1 %1829  ;;  %v1828_v48 = vpop.permute.xlu0 %1827 }
 0x1c7   :  { %v1832_v4 = vsel %vm1662_vm11, %v1828_v48, %v1830_v16  ;;  %v1840_v18 = vadd.f32 %v1830_v16, %v1798_v51 }
 0x1c8   :  { %v1839_v58 = vadd.f32 %v1832_v4, %v1797_v26 }
 0x1ca   :  { %v1868_v9 = vpop.permute.xlu1 %1867  ;;  %v1866_v30 = vpop.permute.xlu0 %1865 }
 0x1cb   :  { %v1873_v0 = vsel %vm1662_vm11, %v1866_v30, %v1868_v9  ;;  %v1880_v27 = vadd.f32 %v1868_v9, %v1838_v60 }
 0x1cc   :  { %v1879_v46 = vadd.f32 %v1873_v0, %v1837_v5 }
 0x1ce   :  { %v1872_v52 = vpop.permute.xlu1 %1871  ;;  %v1870_v62 = vpop.permute.xlu0 %1869 }
 0x1cf   :  { %v1874_v22 = vsel %vm1662_vm11, %v1870_v62, %v1872_v52  ;;  %v1882_v2 = vadd.f32 %v1872_v52, %v1840_v18 }
 0x1d0   :  { %v1881_v28 = vadd.f32 %v1874_v22, %v1839_v58 }
 0x1d2   :  { %v1910_v59 = vpop.permute.xlu1 %1909  ;;  %v1908_v50 = vpop.permute.xlu0 %1907 }
 0x1d3   :  { %v1922_v14 = vadd.f32 %v1910_v59, %v1880_v27  ;;  %v1915_v24 = vsel %vm1662_vm11, %v1908_v50, %v1910_v59 }
 0x1d4   :  { %v1921_v32 = vadd.f32 %v1915_v24, %v1879_v46 }
 0x1d5   :  { %1927 = vst.msk [vmem:[#allocation5 + $0x8] sm:$0xff] %vm1926_vm12, %v1922_v14 }
 0x1d6   :  { %1925 = vst [vmem:[#allocation5] sm:$0xff] %v1921_v32  ;;  %v1914_v31 = vpop.permute.xlu1 %1913  ;;  %v1912_v10 = vpop.permute.xlu0 %1911 }
 0x1d7   :  { %v1924_v40 = vadd.f32 %v1914_v31, %v1882_v2  ;;  %v1916_v49 = vsel %vm1662_vm11, %v1912_v10, %v1914_v31 }
 0x1d8   :  { %v1923_v33 = vadd.f32 %v1916_v49, %v1881_v28 }
 0x1d9   :  { %1929 = vst.msk [vmem:[#allocation5 + $0x18] sm:$0xff] %vm1926_vm12, %v1924_v40 }
 0x1da   :  { %1928 = vst [vmem:[#allocation5 + $0x10] sm:$0xff] %v1923_v33 }
 0x1db   :  { %2040 = shalt.err (!%p2037_p9)
}
 0x1dc   :  { %s2041_s21 = scalar_lea.hbm %s3457_s2, 512 }
 0x1dd   :  { %p2042_p10 = scmp.ne.s32.totalorder %s3457_s2, %s2041_s21  ;;  %p2045_p11 = scmp.lt.u32.totalorder %s2041_s21, %s3457_s2 }
 0x1df   :  { %p2047_p12 = pnand %p2045_p11, %p2042_p10 }
 0x1e1   :  { %2050 = shalt.err (!%p2047_p12)
}
 0x1e2   :  { %s2063_s26 = smov 256   ;;  %s2064_s27 = smov 16  }
 0x1e3   :  { %1941 = dma.vmem_to_hbm [thread:$0]  %s1936_s18, 512, %s3457_s2, [#allocation3], %s2063_s26, %s2063_s26, %s2064_s27  }
 0x1e4   :  { %2053 = dma.done.wait [#allocation3], 512  }
 0x1e5   :  { %2054 = vsyncadd [#allocation3], 4294966784 }
 0x1e6   :  { %1945 = vsyncpa [#allocation3], 1 }
 0x1e7   :  { %1946 = vsyncpa [#allocation4], 1 }

</bundles_post_ra>
